<compile_context>
chip_gen: v7x
topology: tpu7x:2x2x1
jax: 0.10.0
libtpu: 0.0.40
codegen_flags: <defaults>
</compile_context>

<pallas_src>
import functools

import jax
import jax.numpy as jnp
from jax.experimental import pallas as pl
from jax.experimental.pallas import tpu as pltpu


# ---------------------------------------------------------------------------
# Fused bidirectional LSTM layer kernel (recurrent hot loop only).
# ---------------------------------------------------------------------------
def bilstm_dir_kernel(gx_ref, whh_ref, out_ref, hlast_ref, *,
                      seq_len, hidden_dim, unroll):
    # gx_ref   : (seq, Bp, 4H) f32   precomputed x @ W_ih + b for this direction
    #                                (natural time order)
    # whh_ref  : (H, 4H)       bf16  recurrent weights for this direction
    # out_ref  : (seq, Bp, H)  f32   per-step hidden states (natural time order)
    # hlast_ref: (Bp, H)       f32   final hidden state of this direction
    d = pl.program_id(0)                      # 0 = forward, 1 = backward
    H = hidden_dim
    bp = gx_ref.shape[1]

    # Lane mask selecting the `g` (cell-candidate) gate block; hoisted out of
    # the time loop.  One full-tile sigmoid + one full-tile tanh + select keeps
    # the transcendentals on whole vregs (EUP slot) instead of 4 sliced calls.
    lane = jax.lax.broadcasted_iota(jnp.int32, (bp, 4 * H), 1)
    is_g = (lane >= 2 * H) & (lane < 3 * H)

    def step(t, carry):
        h, c = carry
        # Backward direction walks the sequence in reverse; indexing the
        # precomputed slab replaces the old jnp.flip HBM round trips.
        time_idx = jnp.where(d == 0, t, seq_len - 1 - t)
        gates = gx_ref[time_idx] + jnp.dot(
            h.astype(whh_ref.dtype), whh_ref[...],
            preferred_element_type=jnp.float32)           # (Bp, 4H) f32
        act = jnp.where(is_g, jnp.tanh(gates), jax.nn.sigmoid(gates))
        i_g = act[:, 0:H]
        f_g = act[:, H:2 * H]
        g_g = act[:, 2 * H:3 * H]
        o_g = act[:, 3 * H:4 * H]
        c_new = f_g * c + i_g * g_g
        h_new = o_g * jnp.tanh(c_new)
        out_ref[time_idx] = h_new           # VMEM store; HBM writeback happens
        return h_new, c_new                 # once for the whole slab

    h0 = jnp.zeros((bp, H), jnp.float32)
    c0 = jnp.zeros((bp, H), jnp.float32)
    h_last, _ = jax.lax.fori_loop(0, seq_len, step, (h0, c0), unroll=unroll)
    hlast_ref[...] = h_last                 # single final-hidden write


def bilstm_layer(gx, w_hh, hidden_dim, *, unroll=True):
    """Run one bidirectional LSTM layer.

    gx   : (2, seq, Bp, 4H) f32  hoisted input projections [fwd, bwd]
    w_hh : (2, H, 4H)       bf16 recurrent weights          [fwd, bwd]
    returns out (2, seq, Bp, H) f32, hlast (2, Bp, H) f32
    """
    _, seq, bp, _ = gx.shape
    H = hidden_dim
    kernel = functools.partial(
        bilstm_dir_kernel, seq_len=seq, hidden_dim=H, unroll=unroll)
    # TODO(synk): for large H on v7x (64 MiB VMEM), tile the 4H gate dimension
    # of W_hh / gx with an extra grid axis and set vmem_limit_bytes explicitly.
    out, hlast = pl.pallas_call(
        kernel,
        out_shape=(jax.ShapeDtypeStruct((2, seq, bp, H), jnp.float32),
                   jax.ShapeDtypeStruct((2, bp, H), jnp.float32)),
        grid_spec=pltpu.PrefetchScalarGridSpec(
            num_scalar_prefetch=0,
            grid=(2,),      # direction axis: independent -> "parallel" (2 TCs on v7x)
            in_specs=[
                pl.BlockSpec((None, seq, bp, 4 * H), lambda d: (d, 0, 0, 0)),
                pl.BlockSpec((None, H, 4 * H), lambda d: (d, 0, 0)),
            ],
            out_specs=[
                pl.BlockSpec((None, seq, bp, H), lambda d: (d, 0, 0, 0)),
                pl.BlockSpec((None, bp, H), lambda d: (d, 0, 0)),
            ],
        ),
        compiler_params=pltpu.CompilerParams(
            dimension_semantics=("parallel",)),
    )(gx, w_hh)
    return out, hlast


# ---------------------------------------------------------------------------
# Full forward pass (mirrors RNN.forward with embed=True, eval mode)
# ---------------------------------------------------------------------------
def rnn_forward(params, tokens, hidden_dim):
    seq, batch = tokens.shape
    # Pad batch to the 8-sublane granularity so vregs / MXU rows are not idle.
    bp = max(8, ((batch + 7) // 8) * 8)
    if bp != batch:
        tokens = jnp.pad(tokens, ((0, 0), (0, bp - batch)))

    # Embedding lookup (glue).  nn.Dropout is identity in eval mode.
    x = params["embedding"][tokens]                          # (seq, Bp, E) f32

    h_f_last = h_b_last = None
    for lp in params["lstm"]:
        # Hoisted input projection: one big (seq*Bp, D) x (D, 4H) matmul per
        # direction (bf16 MXU inputs, f32 accumulation), all timesteps at once.
        gx = jnp.einsum("sbd,kdg->ksbg",
                        x.astype(jnp.bfloat16), lp["w_ih"],
                        preferred_element_type=jnp.float32) + lp["b"]
        out, hlast = bilstm_layer(gx, lp["w_hh"], hidden_dim)
        x = jnp.concatenate([out[0], out[1]], axis=-1)       # (seq, Bp, 2H)
        h_f_last, h_b_last = hlast[0], hlast[1]

    # hidden[-2] = last-layer fwd final state, hidden[-1] = last-layer bwd final
    hidden_cat = jnp.concatenate([h_f_last, h_b_last], axis=-1)   # (Bp, 2H)
    # Final FC: tiny matmul -> plain XLA is cheaper than a pallas_call launch.
    logits = jnp.dot(hidden_cat, params["fc_w"],
                     preferred_element_type=jnp.float32) + params["fc_b"]
    return logits[:batch]                                     # (B, output_dim)


# ---------------------------------------------------------------------------
# Deterministic parameter construction
# ---------------------------------------------------------------------------
def make_params(key, vocab_size, embedding_dim, hidden_dim, output_dim, n_layers):
    H = hidden_dim
    keys = iter(jax.random.split(key, 3 + n_layers * 3))

    def rnd(shape, dtype=jnp.float32):
        return (jax.random.normal(next(keys), shape, jnp.float32) * 0.1).astype(dtype)

    params = {"embedding": rnd((vocab_size, embedding_dim)), "lstm": []}
    in_dim = embedding_dim
    for _ in range(n_layers):
        params["lstm"].append({
            # [fwd, bwd] stacked, pre-transposed to (in, 4H); bf16 weights,
            # f32 gate math / accumulation.
            "w_ih": rnd((2, in_dim, 4 * H), jnp.bfloat16),
            "w_hh": rnd((2, H, 4 * H), jnp.bfloat16),
            "b":    rnd((2, 1, 1, 4 * H)),        # b_ih + b_hh folded, f32
        })
        in_dim = 2 * H                            # bidirectional feeds next layer
    params["fc_w"] = rnd((2 * H, output_dim))
    params["fc_b"] = rnd((1, output_dim))
    return params


if __name__ == "__main__":
    VOCAB, EMB, HID, OUT, NLAYERS = 100, 32, 32, 2, 2
    SEQ, BATCH = 8, 2

    key = jax.random.PRNGKey(0)
    pkey, xkey = jax.random.split(key)
    params = make_params(pkey, VOCAB, EMB, HID, OUT, NLAYERS)

    # token indices, shape (seq_len, batch) — PyTorch nn.LSTM default layout
    tokens = jax.random.randint(xkey, (SEQ, BATCH), 0, VOCAB, dtype=jnp.int32)

    fwd = jax.jit(rnn_forward, static_argnames=("hidden_dim",))
    out = fwd(params, tokens, hidden_dim=HID)
    out = jax.block_until_ready(out)
    assert out.shape == (BATCH, OUT), out.shape
    assert jnp.all(jnp.isfinite(out))
    print("KERNEL_OK")
</pallas_src>

<mosaic_0001>
module attributes {stable_mosaic.version = 11 : i64} {
  func.func @bilstm_dir_kernel(%arg0: i32, %arg1: memref<1x8x8x128xf32, #tpu.memory_space<vmem>>, %arg2: memref<1x32x128xbf16, #tpu.memory_space<vmem>>, %arg3: memref<1x8x8x32xf32, #tpu.memory_space<vmem>>, %arg4: memref<1x8x32xf32, #tpu.memory_space<vmem>>) attributes {dimension_semantics = [#tpu.dimension_semantics<parallel>], iteration_bounds = array<i64: 2>, scalar_prefetch = 0 : i64, scratch_operands = 0 : i64, tpu.core_type = #tpu.core_type<tc>, window_params = [{transform_indices = @transform_0, window_bounds = array<i64: 1, 8, 8, 128>}, {transform_indices = @transform_1, window_bounds = array<i64: 1, 32, 128>}, {transform_indices = @transform_2, window_bounds = array<i64: 1, 8, 8, 32>}, {transform_indices = @transform_3, window_bounds = array<i64: 1, 8, 32>}]} {
    %0 = tpu.iota {dimensions = array<i32: 1>} : vector<8x128xi32>
    %c64_i32 = arith.constant 64 : i32
    %1 = vector.broadcast %c64_i32 : i32 to vector<8x128xi32>
    %2 = arith.cmpi sge, %0, %1 : vector<8x128xi32>
    %c96_i32 = arith.constant 96 : i32
    %3 = vector.broadcast %c96_i32 : i32 to vector<8x128xi32>
    %4 = arith.cmpi slt, %0, %3 : vector<8x128xi32>
    %5 = arith.andi %2, %4 : vector<8x128xi1>
    %cst = arith.constant 0.000000e+00 : f32
    %6 = vector.broadcast %cst : f32 to vector<8x32xf32>
    %cst_0 = arith.constant 0.000000e+00 : f32
    %7 = vector.broadcast %cst_0 : f32 to vector<8x32xf32>
    %c0_i32 = arith.constant 0 : i32
    %c0_i32_1 = arith.constant 0 : i32
    %8 = arith.cmpi eq, %arg0, %c0_i32_1 : i32
    %c7_i32 = arith.constant 7 : i32
    %9 = arith.subi %c7_i32, %c0_i32 : i32
    %10 = arith.select %8, %c0_i32, %9 : i32
    %c0 = arith.constant 0 : index
    %11 = arith.index_cast %10 : i32 to index
    %c0_2 = arith.constant 0 : index
    %c0_3 = arith.constant 0 : index
    %12 = vector.load %arg1[%c0, %11, %c0_2, %c0_3] : memref<1x8x8x128xf32, #tpu.memory_space<vmem>>, vector<1x1x8x128xf32>
    %13 = vector.shape_cast %12 : vector<1x1x8x128xf32> to vector<8x128xf32>
    %14 = arith.truncf %6 : vector<8x32xf32> to vector<8x32xbf16>
    %c0_4 = arith.constant 0 : index
    %c0_5 = arith.constant 0 : index
    %c0_6 = arith.constant 0 : index
    %15 = vector.load %arg2[%c0_4, %c0_5, %c0_6] : memref<1x32x128xbf16, #tpu.memory_space<vmem>>, vector<1x32x128xbf16>
    %16 = vector.shape_cast %15 : vector<1x32x128xbf16> to vector<32x128xbf16>
    %cst_7 = arith.constant dense<0.000000e+00> : vector<8x128xf32>
    %17 = tpu.matmul %14, %16, %cst_7 {dimension_numbers = #tpu.dot_dimension_numbers<[1], [0], [0], [1], [0, 0, 1, 1], [], []>} : vector<8x32xbf16>, vector<32x128xbf16>, vector<8x128xf32> -> vector<8x128xf32>
    %18 = arith.addf %13, %17 : vector<8x128xf32>
    %19 = math.tanh %18 : vector<8x128xf32>
    %20 = arith.negf %18 : vector<8x128xf32>
    %21 = math.exp %20 : vector<8x128xf32>
    %cst_8 = arith.constant 1.000000e+00 : f32
    %22 = vector.broadcast %cst_8 : f32 to vector<8x128xf32>
    %23 = arith.addf %22, %21 : vector<8x128xf32>
    %24 = arith.divf %22, %23 : vector<8x128xf32>
    %25 = arith.select %5, %19, %24 : vector<8x128xi1>, vector<8x128xf32>
    %26 = vector.extract_strided_slice %25 {offsets = [0, 0], sizes = [8, 32], strides = [1, 1]} : vector<8x128xf32> to vector<8x32xf32>
    %27 = vector.extract_strided_slice %25 {offsets = [0, 32], sizes = [8, 32], strides = [1, 1]} : vector<8x128xf32> to vector<8x32xf32>
    %28 = vector.extract_strided_slice %25 {offsets = [0, 64], sizes = [8, 32], strides = [1, 1]} : vector<8x128xf32> to vector<8x32xf32>
    %29 = vector.extract_strided_slice %25 {offsets = [0, 96], sizes = [8, 32], strides = [1, 1]} : vector<8x128xf32> to vector<8x32xf32>
    %30 = arith.mulf %27, %7 : vector<8x32xf32>
    %31 = arith.mulf %26, %28 : vector<8x32xf32>
    %32 = arith.addf %30, %31 : vector<8x32xf32>
    %33 = math.tanh %32 : vector<8x32xf32>
    %34 = arith.mulf %29, %33 : vector<8x32xf32>
    %c0_9 = arith.constant 0 : index
    %35 = arith.index_cast %10 : i32 to index
    %c0_10 = arith.constant 0 : index
    %c0_11 = arith.constant 0 : index
    %36 = vector.load %arg3[%c0_9, %35, %c0_10, %c0_11] : memref<1x8x8x32xf32, #tpu.memory_space<vmem>>, vector<1x1x8x32xf32>
    %37 = vector.shape_cast %36 : vector<1x1x8x32xf32> to vector<8x32xf32>
    %38 = vector.shape_cast %34 : vector<8x32xf32> to vector<1x1x8x32xf32>
    tpu.vector_store %arg3[%c0_9, %35, %c0_10, %c0_11], %38 {strides = array<i32>} : memref<1x8x8x32xf32, #tpu.memory_space<vmem>>, vector<1x1x8x32xf32>,
    %c1_i32 = arith.constant 1 : i32
    %c0_i32_12 = arith.constant 0 : i32
    %39 = arith.cmpi eq, %arg0, %c0_i32_12 : i32
    %c7_i32_13 = arith.constant 7 : i32
    %40 = arith.subi %c7_i32_13, %c1_i32 : i32
    %41 = arith.select %39, %c1_i32, %40 : i32
    %c0_14 = arith.constant 0 : index
    %42 = arith.index_cast %41 : i32 to index
    %c0_15 = arith.constant 0 : index
    %c0_16 = arith.constant 0 : index
    %43 = vector.load %arg1[%c0_14, %42, %c0_15, %c0_16] : memref<1x8x8x128xf32, #tpu.memory_space<vmem>>, vector<1x1x8x128xf32>
    %44 = vector.shape_cast %43 : vector<1x1x8x128xf32> to vector<8x128xf32>
    %45 = arith.truncf %34 : vector<8x32xf32> to vector<8x32xbf16>
    %c0_17 = arith.constant 0 : index
    %c0_18 = arith.constant 0 : index
    %c0_19 = arith.constant 0 : index
    %46 = vector.load %arg2[%c0_17, %c0_18, %c0_19] : memref<1x32x128xbf16, #tpu.memory_space<vmem>>, vector<1x32x128xbf16>
    %47 = vector.shape_cast %46 : vector<1x32x128xbf16> to vector<32x128xbf16>
    %cst_20 = arith.constant dense<0.000000e+00> : vector<8x128xf32>
    %48 = tpu.matmul %45, %47, %cst_20 {dimension_numbers = #tpu.dot_dimension_numbers<[1], [0], [0], [1], [0, 0, 1, 1], [], []>} : vector<8x32xbf16>, vector<32x128xbf16>, vector<8x128xf32> -> vector<8x128xf32>
    %49 = arith.addf %44, %48 : vector<8x128xf32>
    %50 = math.tanh %49 : vector<8x128xf32>
    %51 = arith.negf %49 : vector<8x128xf32>
    %52 = math.exp %51 : vector<8x128xf32>
    %cst_21 = arith.constant 1.000000e+00 : f32
    %53 = vector.broadcast %cst_21 : f32 to vector<8x128xf32>
    %54 = arith.addf %53, %52 : vector<8x128xf32>
    %55 = arith.divf %53, %54 : vector<8x128xf32>
    %56 = arith.select %5, %50, %55 : vector<8x128xi1>, vector<8x128xf32>
    %57 = vector.extract_strided_slice %56 {offsets = [0, 0], sizes = [8, 32], strides = [1, 1]} : vector<8x128xf32> to vector<8x32xf32>
    %58 = vector.extract_strided_slice %56 {offsets = [0, 32], sizes = [8, 32], strides = [1, 1]} : vector<8x128xf32> to vector<8x32xf32>
    %59 = vector.extract_strided_slice %56 {offsets = [0, 64], sizes = [8, 32], strides = [1, 1]} : vector<8x128xf32> to vector<8x32xf32>
    %60 = vector.extract_strided_slice %56 {offsets = [0, 96], sizes = [8, 32], strides = [1, 1]} : vector<8x128xf32> to vector<8x32xf32>
    %61 = arith.mulf %58, %32 : vector<8x32xf32>
    %62 = arith.mulf %57, %59 : vector<8x32xf32>
    %63 = arith.addf %61, %62 : vector<8x32xf32>
    %64 = math.tanh %63 : vector<8x32xf32>
    %65 = arith.mulf %60, %64 : vector<8x32xf32>
    %c0_22 = arith.constant 0 : index
    %66 = arith.index_cast %41 : i32 to index
    %c0_23 = arith.constant 0 : index
    %c0_24 = arith.constant 0 : index
    %67 = vector.load %arg3[%c0_22, %66, %c0_23, %c0_24] : memref<1x8x8x32xf32, #tpu.memory_space<vmem>>, vector<1x1x8x32xf32>
    %68 = vector.shape_cast %67 : vector<1x1x8x32xf32> to vector<8x32xf32>
    %69 = vector.shape_cast %65 : vector<8x32xf32> to vector<1x1x8x32xf32>
    tpu.vector_store %arg3[%c0_22, %66, %c0_23, %c0_24], %69 {strides = array<i32>} : memref<1x8x8x32xf32, #tpu.memory_space<vmem>>, vector<1x1x8x32xf32>,
    %c2_i32 = arith.constant 2 : i32
    %c0_i32_25 = arith.constant 0 : i32
    %70 = arith.cmpi eq, %arg0, %c0_i32_25 : i32
    %c7_i32_26 = arith.constant 7 : i32
    %71 = arith.subi %c7_i32_26, %c2_i32 : i32
    %72 = arith.select %70, %c2_i32, %71 : i32
    %c0_27 = arith.constant 0 : index
    %73 = arith.index_cast %72 : i32 to index
    %c0_28 = arith.constant 0 : index
    %c0_29 = arith.constant 0 : index
    %74 = vector.load %arg1[%c0_27, %73, %c0_28, %c0_29] : memref<1x8x8x128xf32, #tpu.memory_space<vmem>>, vector<1x1x8x128xf32>
    %75 = vector.shape_cast %74 : vector<1x1x8x128xf32> to vector<8x128xf32>
    %76 = arith.truncf %65 : vector<8x32xf32> to vector<8x32xbf16>
    %c0_30 = arith.constant 0 : index
    %c0_31 = arith.constant 0 : index
    %c0_32 = arith.constant 0 : index
    %77 = vector.load %arg2[%c0_30, %c0_31, %c0_32] : memref<1x32x128xbf16, #tpu.memory_space<vmem>>, vector<1x32x128xbf16>
    %78 = vector.shape_cast %77 : vector<1x32x128xbf16> to vector<32x128xbf16>
    %cst_33 = arith.constant dense<0.000000e+00> : vector<8x128xf32>
    %79 = tpu.matmul %76, %78, %cst_33 {dimension_numbers = #tpu.dot_dimension_numbers<[1], [0], [0], [1], [0, 0, 1, 1], [], []>} : vector<8x32xbf16>, vector<32x128xbf16>, vector<8x128xf32> -> vector<8x128xf32>
    %80 = arith.addf %75, %79 : vector<8x128xf32>
    %81 = math.tanh %80 : vector<8x128xf32>
    %82 = arith.negf %80 : vector<8x128xf32>
    %83 = math.exp %82 : vector<8x128xf32>
    %cst_34 = arith.constant 1.000000e+00 : f32
    %84 = vector.broadcast %cst_34 : f32 to vector<8x128xf32>
    %85 = arith.addf %84, %83 : vector<8x128xf32>
    %86 = arith.divf %84, %85 : vector<8x128xf32>
    %87 = arith.select %5, %81, %86 : vector<8x128xi1>, vector<8x128xf32>
    %88 = vector.extract_strided_slice %87 {offsets = [0, 0], sizes = [8, 32], strides = [1, 1]} : vector<8x128xf32> to vector<8x32xf32>
    %89 = vector.extract_strided_slice %87 {offsets = [0, 32], sizes = [8, 32], strides = [1, 1]} : vector<8x128xf32> to vector<8x32xf32>
    %90 = vector.extract_strided_slice %87 {offsets = [0, 64], sizes = [8, 32], strides = [1, 1]} : vector<8x128xf32> to vector<8x32xf32>
    %91 = vector.extract_strided_slice %87 {offsets = [0, 96], sizes = [8, 32], strides = [1, 1]} : vector<8x128xf32> to vector<8x32xf32>
    %92 = arith.mulf %89, %63 : vector<8x32xf32>
    %93 = arith.mulf %88, %90 : vector<8x32xf32>
    %94 = arith.addf %92, %93 : vector<8x32xf32>
    %95 = math.tanh %94 : vector<8x32xf32>
    %96 = arith.mulf %91, %95 : vector<8x32xf32>
    %c0_35 = arith.constant 0 : index
    %97 = arith.index_cast %72 : i32 to index
    %c0_36 = arith.constant 0 : index
    %c0_37 = arith.constant 0 : index
    %98 = vector.load %arg3[%c0_35, %97, %c0_36, %c0_37] : memref<1x8x8x32xf32, #tpu.memory_space<vmem>>, vector<1x1x8x32xf32>
    %99 = vector.shape_cast %98 : vector<1x1x8x32xf32> to vector<8x32xf32>
    %100 = vector.shape_cast %96 : vector<8x32xf32> to vector<1x1x8x32xf32>
    tpu.vector_store %arg3[%c0_35, %97, %c0_36, %c0_37], %100 {strides = array<i32>} : memref<1x8x8x32xf32, #tpu.memory_space<vmem>>, vector<1x1x8x32xf32>,
    %c3_i32 = arith.constant 3 : i32
    %c0_i32_38 = arith.constant 0 : i32
    %101 = arith.cmpi eq, %arg0, %c0_i32_38 : i32
    %c7_i32_39 = arith.constant 7 : i32
    %102 = arith.subi %c7_i32_39, %c3_i32 : i32
    %103 = arith.select %101, %c3_i32, %102 : i32
    %c0_40 = arith.constant 0 : index
    %104 = arith.index_cast %103 : i32 to index
    %c0_41 = arith.constant 0 : index
    %c0_42 = arith.constant 0 : index
    %105 = vector.load %arg1[%c0_40, %104, %c0_41, %c0_42] : memref<1x8x8x128xf32, #tpu.memory_space<vmem>>, vector<1x1x8x128xf32>
    %106 = vector.shape_cast %105 : vector<1x1x8x128xf32> to vector<8x128xf32>
    %107 = arith.truncf %96 : vector<8x32xf32> to vector<8x32xbf16>
    %c0_43 = arith.constant 0 : index
    %c0_44 = arith.constant 0 : index
    %c0_45 = arith.constant 0 : index
    %108 = vector.load %arg2[%c0_43, %c0_44, %c0_45] : memref<1x32x128xbf16, #tpu.memory_space<vmem>>, vector<1x32x128xbf16>
    %109 = vector.shape_cast %108 : vector<1x32x128xbf16> to vector<32x128xbf16>
    %cst_46 = arith.constant dense<0.000000e+00> : vector<8x128xf32>
    %110 = tpu.matmul %107, %109, %cst_46 {dimension_numbers = #tpu.dot_dimension_numbers<[1], [0], [0], [1], [0, 0, 1, 1], [], []>} : vector<8x32xbf16>, vector<32x128xbf16>, vector<8x128xf32> -> vector<8x128xf32>
    %111 = arith.addf %106, %110 : vector<8x128xf32>
    %112 = math.tanh %111 : vector<8x128xf32>
    %113 = arith.negf %111 : vector<8x128xf32>
    %114 = math.exp %113 : vector<8x128xf32>
    %cst_47 = arith.constant 1.000000e+00 : f32
    %115 = vector.broadcast %cst_47 : f32 to vector<8x128xf32>
    %116 = arith.addf %115, %114 : vector<8x128xf32>
    %117 = arith.divf %115, %116 : vector<8x128xf32>
    %118 = arith.select %5, %112, %117 : vector<8x128xi1>, vector<8x128xf32>
    %119 = vector.extract_strided_slice %118 {offsets = [0, 0], sizes = [8, 32], strides = [1, 1]} : vector<8x128xf32> to vector<8x32xf32>
    %120 = vector.extract_strided_slice %118 {offsets = [0, 32], sizes = [8, 32], strides = [1, 1]} : vector<8x128xf32> to vector<8x32xf32>
    %121 = vector.extract_strided_slice %118 {offsets = [0, 64], sizes = [8, 32], strides = [1, 1]} : vector<8x128xf32> to vector<8x32xf32>
    %122 = vector.extract_strided_slice %118 {offsets = [0, 96], sizes = [8, 32], strides = [1, 1]} : vector<8x128xf32> to vector<8x32xf32>
    %123 = arith.mulf %120, %94 : vector<8x32xf32>
    %124 = arith.mulf %119, %121 : vector<8x32xf32>
    %125 = arith.addf %123, %124 : vector<8x32xf32>
    %126 = math.tanh %125 : vector<8x32xf32>
    %127 = arith.mulf %122, %126 : vector<8x32xf32>
    %c0_48 = arith.constant 0 : index
    %128 = arith.index_cast %103 : i32 to index
    %c0_49 = arith.constant 0 : index
    %c0_50 = arith.constant 0 : index
    %129 = vector.load %arg3[%c0_48, %128, %c0_49, %c0_50] : memref<1x8x8x32xf32, #tpu.memory_space<vmem>>, vector<1x1x8x32xf32>
    %130 = vector.shape_cast %129 : vector<1x1x8x32xf32> to vector<8x32xf32>
    %131 = vector.shape_cast %127 : vector<8x32xf32> to vector<1x1x8x32xf32>
    tpu.vector_store %arg3[%c0_48, %128, %c0_49, %c0_50], %131 {strides = array<i32>} : memref<1x8x8x32xf32, #tpu.memory_space<vmem>>, vector<1x1x8x32xf32>,
    %c4_i32 = arith.constant 4 : i32
    %c0_i32_51 = arith.constant 0 : i32
    %132 = arith.cmpi eq, %arg0, %c0_i32_51 : i32
    %c7_i32_52 = arith.constant 7 : i32
    %133 = arith.subi %c7_i32_52, %c4_i32 : i32
    %134 = arith.select %132, %c4_i32, %133 : i32
    %c0_53 = arith.constant 0 : index
    %135 = arith.index_cast %134 : i32 to index
    %c0_54 = arith.constant 0 : index
    %c0_55 = arith.constant 0 : index
    %136 = vector.load %arg1[%c0_53, %135, %c0_54, %c0_55] : memref<1x8x8x128xf32, #tpu.memory_space<vmem>>, vector<1x1x8x128xf32>
    %137 = vector.shape_cast %136 : vector<1x1x8x128xf32> to vector<8x128xf32>
    %138 = arith.truncf %127 : vector<8x32xf32> to vector<8x32xbf16>
    %c0_56 = arith.constant 0 : index
    %c0_57 = arith.constant 0 : index
    %c0_58 = arith.constant 0 : index
    %139 = vector.load %arg2[%c0_56, %c0_57, %c0_58] : memref<1x32x128xbf16, #tpu.memory_space<vmem>>, vector<1x32x128xbf16>
    %140 = vector.shape_cast %139 : vector<1x32x128xbf16> to vector<32x128xbf16>
    %cst_59 = arith.constant dense<0.000000e+00> : vector<8x128xf32>
    %141 = tpu.matmul %138, %140, %cst_59 {dimension_numbers = #tpu.dot_dimension_numbers<[1], [0], [0], [1], [0, 0, 1, 1], [], []>} : vector<8x32xbf16>, vector<32x128xbf16>, vector<8x128xf32> -> vector<8x128xf32>
    %142 = arith.addf %137, %141 : vector<8x128xf32>
    %143 = math.tanh %142 : vector<8x128xf32>
    %144 = arith.negf %142 : vector<8x128xf32>
    %145 = math.exp %144 : vector<8x128xf32>
    %cst_60 = arith.constant 1.000000e+00 : f32
    %146 = vector.broadcast %cst_60 : f32 to vector<8x128xf32>
    %147 = arith.addf %146, %145 : vector<8x128xf32>
    %148 = arith.divf %146, %147 : vector<8x128xf32>
    %149 = arith.select %5, %143, %148 : vector<8x128xi1>, vector<8x128xf32>
    %150 = vector.extract_strided_slice %149 {offsets = [0, 0], sizes = [8, 32], strides = [1, 1]} : vector<8x128xf32> to vector<8x32xf32>
    %151 = vector.extract_strided_slice %149 {offsets = [0, 32], sizes = [8, 32], strides = [1, 1]} : vector<8x128xf32> to vector<8x32xf32>
    %152 = vector.extract_strided_slice %149 {offsets = [0, 64], sizes = [8, 32], strides = [1, 1]} : vector<8x128xf32> to vector<8x32xf32>
    %153 = vector.extract_strided_slice %149 {offsets = [0, 96], sizes = [8, 32], strides = [1, 1]} : vector<8x128xf32> to vector<8x32xf32>
    %154 = arith.mulf %151, %125 : vector<8x32xf32>
    %155 = arith.mulf %150, %152 : vector<8x32xf32>
    %156 = arith.addf %154, %155 : vector<8x32xf32>
    %157 = math.tanh %156 : vector<8x32xf32>
    %158 = arith.mulf %153, %157 : vector<8x32xf32>
    %c0_61 = arith.constant 0 : index
    %159 = arith.index_cast %134 : i32 to index
    %c0_62 = arith.constant 0 : index
    %c0_63 = arith.constant 0 : index
    %160 = vector.load %arg3[%c0_61, %159, %c0_62, %c0_63] : memref<1x8x8x32xf32, #tpu.memory_space<vmem>>, vector<1x1x8x32xf32>
    %161 = vector.shape_cast %160 : vector<1x1x8x32xf32> to vector<8x32xf32>
    %162 = vector.shape_cast %158 : vector<8x32xf32> to vector<1x1x8x32xf32>
    tpu.vector_store %arg3[%c0_61, %159, %c0_62, %c0_63], %162 {strides = array<i32>} : memref<1x8x8x32xf32, #tpu.memory_space<vmem>>, vector<1x1x8x32xf32>,
    %c5_i32 = arith.constant 5 : i32
    %c0_i32_64 = arith.constant 0 : i32
    %163 = arith.cmpi eq, %arg0, %c0_i32_64 : i32
    %c7_i32_65 = arith.constant 7 : i32
    %164 = arith.subi %c7_i32_65, %c5_i32 : i32
    %165 = arith.select %163, %c5_i32, %164 : i32
    %c0_66 = arith.constant 0 : index
    %166 = arith.index_cast %165 : i32 to index
    %c0_67 = arith.constant 0 : index
    %c0_68 = arith.constant 0 : index
    %167 = vector.load %arg1[%c0_66, %166, %c0_67, %c0_68] : memref<1x8x8x128xf32, #tpu.memory_space<vmem>>, vector<1x1x8x128xf32>
    %168 = vector.shape_cast %167 : vector<1x1x8x128xf32> to vector<8x128xf32>
    %169 = arith.truncf %158 : vector<8x32xf32> to vector<8x32xbf16>
    %c0_69 = arith.constant 0 : index
    %c0_70 = arith.constant 0 : index
    %c0_71 = arith.constant 0 : index
    %170 = vector.load %arg2[%c0_69, %c0_70, %c0_71] : memref<1x32x128xbf16, #tpu.memory_space<vmem>>, vector<1x32x128xbf16>
    %171 = vector.shape_cast %170 : vector<1x32x128xbf16> to vector<32x128xbf16>
    %cst_72 = arith.constant dense<0.000000e+00> : vector<8x128xf32>
    %172 = tpu.matmul %169, %171, %cst_72 {dimension_numbers = #tpu.dot_dimension_numbers<[1], [0], [0], [1], [0, 0, 1, 1], [], []>} : vector<8x32xbf16>, vector<32x128xbf16>, vector<8x128xf32> -> vector<8x128xf32>
    %173 = arith.addf %168, %172 : vector<8x128xf32>
    %174 = math.tanh %173 : vector<8x128xf32>
    %175 = arith.negf %173 : vector<8x128xf32>
    %176 = math.exp %175 : vector<8x128xf32>
    %cst_73 = arith.constant 1.000000e+00 : f32
    %177 = vector.broadcast %cst_73 : f32 to vector<8x128xf32>
    %178 = arith.addf %177, %176 : vector<8x128xf32>
    %179 = arith.divf %177, %178 : vector<8x128xf32>
    %180 = arith.select %5, %174, %179 : vector<8x128xi1>, vector<8x128xf32>
    %181 = vector.extract_strided_slice %180 {offsets = [0, 0], sizes = [8, 32], strides = [1, 1]} : vector<8x128xf32> to vector<8x32xf32>
    %182 = vector.extract_strided_slice %180 {offsets = [0, 32], sizes = [8, 32], strides = [1, 1]} : vector<8x128xf32> to vector<8x32xf32>
    %183 = vector.extract_strided_slice %180 {offsets = [0, 64], sizes = [8, 32], strides = [1, 1]} : vector<8x128xf32> to vector<8x32xf32>
    %184 = vector.extract_strided_slice %180 {offsets = [0, 96], sizes = [8, 32], strides = [1, 1]} : vector<8x128xf32> to vector<8x32xf32>
    %185 = arith.mulf %182, %156 : vector<8x32xf32>
    %186 = arith.mulf %181, %183 : vector<8x32xf32>
    %187 = arith.addf %185, %186 : vector<8x32xf32>
    %188 = math.tanh %187 : vector<8x32xf32>
    %189 = arith.mulf %184, %188 : vector<8x32xf32>
    %c0_74 = arith.constant 0 : index
    %190 = arith.index_cast %165 : i32 to index
    %c0_75 = arith.constant 0 : index
    %c0_76 = arith.constant 0 : index
    %191 = vector.load %arg3[%c0_74, %190, %c0_75, %c0_76] : memref<1x8x8x32xf32, #tpu.memory_space<vmem>>, vector<1x1x8x32xf32>
    %192 = vector.shape_cast %191 : vector<1x1x8x32xf32> to vector<8x32xf32>
    %193 = vector.shape_cast %189 : vector<8x32xf32> to vector<1x1x8x32xf32>
    tpu.vector_store %arg3[%c0_74, %190, %c0_75, %c0_76], %193 {strides = array<i32>} : memref<1x8x8x32xf32, #tpu.memory_space<vmem>>, vector<1x1x8x32xf32>,
    %c6_i32 = arith.constant 6 : i32
    %c0_i32_77 = arith.constant 0 : i32
    %194 = arith.cmpi eq, %arg0, %c0_i32_77 : i32
    %c7_i32_78 = arith.constant 7 : i32
    %195 = arith.subi %c7_i32_78, %c6_i32 : i32
    %196 = arith.select %194, %c6_i32, %195 : i32
    %c0_79 = arith.constant 0 : index
    %197 = arith.index_cast %196 : i32 to index
    %c0_80 = arith.constant 0 : index
    %c0_81 = arith.constant 0 : index
    %198 = vector.load %arg1[%c0_79, %197, %c0_80, %c0_81] : memref<1x8x8x128xf32, #tpu.memory_space<vmem>>, vector<1x1x8x128xf32>
    %199 = vector.shape_cast %198 : vector<1x1x8x128xf32> to vector<8x128xf32>
    %200 = arith.truncf %189 : vector<8x32xf32> to vector<8x32xbf16>
    %c0_82 = arith.constant 0 : index
    %c0_83 = arith.constant 0 : index
    %c0_84 = arith.constant 0 : index
    %201 = vector.load %arg2[%c0_82, %c0_83, %c0_84] : memref<1x32x128xbf16, #tpu.memory_space<vmem>>, vector<1x32x128xbf16>
    %202 = vector.shape_cast %201 : vector<1x32x128xbf16> to vector<32x128xbf16>
    %cst_85 = arith.constant dense<0.000000e+00> : vector<8x128xf32>
    %203 = tpu.matmul %200, %202, %cst_85 {dimension_numbers = #tpu.dot_dimension_numbers<[1], [0], [0], [1], [0, 0, 1, 1], [], []>} : vector<8x32xbf16>, vector<32x128xbf16>, vector<8x128xf32> -> vector<8x128xf32>
    %204 = arith.addf %199, %203 : vector<8x128xf32>
    %205 = math.tanh %204 : vector<8x128xf32>
    %206 = arith.negf %204 : vector<8x128xf32>
    %207 = math.exp %206 : vector<8x128xf32>
    %cst_86 = arith.constant 1.000000e+00 : f32
    %208 = vector.broadcast %cst_86 : f32 to vector<8x128xf32>
    %209 = arith.addf %208, %207 : vector<8x128xf32>
    %210 = arith.divf %208, %209 : vector<8x128xf32>
    %211 = arith.select %5, %205, %210 : vector<8x128xi1>, vector<8x128xf32>
    %212 = vector.extract_strided_slice %211 {offsets = [0, 0], sizes = [8, 32], strides = [1, 1]} : vector<8x128xf32> to vector<8x32xf32>
    %213 = vector.extract_strided_slice %211 {offsets = [0, 32], sizes = [8, 32], strides = [1, 1]} : vector<8x128xf32> to vector<8x32xf32>
    %214 = vector.extract_strided_slice %211 {offsets = [0, 64], sizes = [8, 32], strides = [1, 1]} : vector<8x128xf32> to vector<8x32xf32>
    %215 = vector.extract_strided_slice %211 {offsets = [0, 96], sizes = [8, 32], strides = [1, 1]} : vector<8x128xf32> to vector<8x32xf32>
    %216 = arith.mulf %213, %187 : vector<8x32xf32>
    %217 = arith.mulf %212, %214 : vector<8x32xf32>
    %218 = arith.addf %216, %217 : vector<8x32xf32>
    %219 = math.tanh %218 : vector<8x32xf32>
    %220 = arith.mulf %215, %219 : vector<8x32xf32>
    %c0_87 = arith.constant 0 : index
    %221 = arith.index_cast %196 : i32 to index
    %c0_88 = arith.constant 0 : index
    %c0_89 = arith.constant 0 : index
    %222 = vector.load %arg3[%c0_87, %221, %c0_88, %c0_89] : memref<1x8x8x32xf32, #tpu.memory_space<vmem>>, vector<1x1x8x32xf32>
    %223 = vector.shape_cast %222 : vector<1x1x8x32xf32> to vector<8x32xf32>
    %224 = vector.shape_cast %220 : vector<8x32xf32> to vector<1x1x8x32xf32>
    tpu.vector_store %arg3[%c0_87, %221, %c0_88, %c0_89], %224 {strides = array<i32>} : memref<1x8x8x32xf32, #tpu.memory_space<vmem>>, vector<1x1x8x32xf32>,
    %c7_i32_90 = arith.constant 7 : i32
    %c0_i32_91 = arith.constant 0 : i32
    %225 = arith.cmpi eq, %arg0, %c0_i32_91 : i32
    %c7_i32_92 = arith.constant 7 : i32
    %226 = arith.subi %c7_i32_92, %c7_i32_90 : i32
    %227 = arith.select %225, %c7_i32_90, %226 : i32
    %c0_93 = arith.constant 0 : index
    %228 = arith.index_cast %227 : i32 to index
    %c0_94 = arith.constant 0 : index
    %c0_95 = arith.constant 0 : index
    %229 = vector.load %arg1[%c0_93, %228, %c0_94, %c0_95] : memref<1x8x8x128xf32, #tpu.memory_space<vmem>>, vector<1x1x8x128xf32>
    %230 = vector.shape_cast %229 : vector<1x1x8x128xf32> to vector<8x128xf32>
    %231 = arith.truncf %220 : vector<8x32xf32> to vector<8x32xbf16>
    %c0_96 = arith.constant 0 : index
    %c0_97 = arith.constant 0 : index
    %c0_98 = arith.constant 0 : index
    %232 = vector.load %arg2[%c0_96, %c0_97, %c0_98] : memref<1x32x128xbf16, #tpu.memory_space<vmem>>, vector<1x32x128xbf16>
    %233 = vector.shape_cast %232 : vector<1x32x128xbf16> to vector<32x128xbf16>
    %cst_99 = arith.constant dense<0.000000e+00> : vector<8x128xf32>
    %234 = tpu.matmul %231, %233, %cst_99 {dimension_numbers = #tpu.dot_dimension_numbers<[1], [0], [0], [1], [0, 0, 1, 1], [], []>} : vector<8x32xbf16>, vector<32x128xbf16>, vector<8x128xf32> -> vector<8x128xf32>
    %235 = arith.addf %230, %234 : vector<8x128xf32>
    %236 = math.tanh %235 : vector<8x128xf32>
    %237 = arith.negf %235 : vector<8x128xf32>
    %238 = math.exp %237 : vector<8x128xf32>
    %cst_100 = arith.constant 1.000000e+00 : f32
    %239 = vector.broadcast %cst_100 : f32 to vector<8x128xf32>
    %240 = arith.addf %239, %238 : vector<8x128xf32>
    %241 = arith.divf %239, %240 : vector<8x128xf32>
    %242 = arith.select %5, %236, %241 : vector<8x128xi1>, vector<8x128xf32>
    %243 = vector.extract_strided_slice %242 {offsets = [0, 0], sizes = [8, 32], strides = [1, 1]} : vector<8x128xf32> to vector<8x32xf32>
    %244 = vector.extract_strided_slice %242 {offsets = [0, 32], sizes = [8, 32], strides = [1, 1]} : vector<8x128xf32> to vector<8x32xf32>
    %245 = vector.extract_strided_slice %242 {offsets = [0, 64], sizes = [8, 32], strides = [1, 1]} : vector<8x128xf32> to vector<8x32xf32>
    %246 = vector.extract_strided_slice %242 {offsets = [0, 96], sizes = [8, 32], strides = [1, 1]} : vector<8x128xf32> to vector<8x32xf32>
    %247 = arith.mulf %244, %218 : vector<8x32xf32>
    %248 = arith.mulf %243, %245 : vector<8x32xf32>
    %249 = arith.addf %247, %248 : vector<8x32xf32>
    %250 = math.tanh %249 : vector<8x32xf32>
    %251 = arith.mulf %246, %250 : vector<8x32xf32>
    %c0_101 = arith.constant 0 : index
    %252 = arith.index_cast %227 : i32 to index
    %c0_102 = arith.constant 0 : index
    %c0_103 = arith.constant 0 : index
    %253 = vector.load %arg3[%c0_101, %252, %c0_102, %c0_103] : memref<1x8x8x32xf32, #tpu.memory_space<vmem>>, vector<1x1x8x32xf32>
    %254 = vector.shape_cast %253 : vector<1x1x8x32xf32> to vector<8x32xf32>
    %255 = vector.shape_cast %251 : vector<8x32xf32> to vector<1x1x8x32xf32>
    tpu.vector_store %arg3[%c0_101, %252, %c0_102, %c0_103], %255 {strides = array<i32>} : memref<1x8x8x32xf32, #tpu.memory_space<vmem>>, vector<1x1x8x32xf32>,
    %c8_i32 = arith.constant 8 : i32
    %c0_104 = arith.constant 0 : index
    %c0_105 = arith.constant 0 : index
    %c0_106 = arith.constant 0 : index
    %256 = vector.load %arg4[%c0_104, %c0_105, %c0_106] : memref<1x8x32xf32, #tpu.memory_space<vmem>>, vector<1x8x32xf32>
    %257 = vector.shape_cast %256 : vector<1x8x32xf32> to vector<8x32xf32>
    %258 = vector.shape_cast %251 : vector<8x32xf32> to vector<1x8x32xf32>
    tpu.vector_store %arg4[%c0_104, %c0_105, %c0_106], %258 {strides = array<i32>} : memref<1x8x32xf32, #tpu.memory_space<vmem>>, vector<1x8x32xf32>,
    return
  }
  func.func @transform_0(%arg0: i32) -> (i32, i32, i32, i32) {
    %c0_i32 = arith.constant 0 : i32
    %c0_i32_0 = arith.constant 0 : i32
    %c0_i32_1 = arith.constant 0 : i32
    %c0_i32_2 = arith.constant 0 : i32
    return %arg0, %c0_i32, %c0_i32_0, %c0_i32_1 : i32, i32, i32, i32
  }
  func.func @transform_1(%arg0: i32) -> (i32, i32, i32) {
    %c0_i32 = arith.constant 0 : i32
    %c0_i32_0 = arith.constant 0 : i32
    %c0_i32_1 = arith.constant 0 : i32
    return %arg0, %c0_i32, %c0_i32_0 : i32, i32, i32
  }
  func.func @transform_2(%arg0: i32) -> (i32, i32, i32, i32) {
    %c0_i32 = arith.constant 0 : i32
    %c0_i32_0 = arith.constant 0 : i32
    %c0_i32_1 = arith.constant 0 : i32
    %c0_i32_2 = arith.constant 0 : i32
    return %arg0, %c0_i32, %c0_i32_0, %c0_i32_1 : i32, i32, i32, i32
  }
  func.func @transform_3(%arg0: i32) -> (i32, i32, i32) {
    %c0_i32 = arith.constant 0 : i32
    %c0_i32_0 = arith.constant 0 : i32
    %c0_i32_1 = arith.constant 0 : i32
    return %arg0, %c0_i32, %c0_i32_0 : i32, i32, i32
  }
}

module attributes {stable_mosaic.version = 11 : i64} {
  func.func @bilstm_dir_kernel(%arg0: i32, %arg1: memref<1x8x8x128xf32, #tpu.memory_space<vmem>>, %arg2: memref<1x32x128xbf16, #tpu.memory_space<vmem>>, %arg3: memref<1x8x8x32xf32, #tpu.memory_space<vmem>>, %arg4: memref<1x8x32xf32, #tpu.memory_space<vmem>>) attributes {dimension_semantics = [#tpu.dimension_semantics<parallel>], iteration_bounds = array<i64: 2>, scalar_prefetch = 0 : i64, scratch_operands = 0 : i64, tpu.core_type = #tpu.core_type<tc>, window_params = [{transform_indices = @transform_0, window_bounds = array<i64: 1, 8, 8, 128>}, {transform_indices = @transform_1, window_bounds = array<i64: 1, 32, 128>}, {transform_indices = @transform_2, window_bounds = array<i64: 1, 8, 8, 32>}, {transform_indices = @transform_3, window_bounds = array<i64: 1, 8, 32>}]} {
    %0 = tpu.iota {dimensions = array<i32: 1>} : vector<8x128xi32>
    %c64_i32 = arith.constant 64 : i32
    %1 = vector.broadcast %c64_i32 : i32 to vector<8x128xi32>
    %2 = arith.cmpi sge, %0, %1 : vector<8x128xi32>
    %c96_i32 = arith.constant 96 : i32
    %3 = vector.broadcast %c96_i32 : i32 to vector<8x128xi32>
    %4 = arith.cmpi slt, %0, %3 : vector<8x128xi32>
    %5 = arith.andi %2, %4 : vector<8x128xi1>
    %cst = arith.constant 0.000000e+00 : f32
    %6 = vector.broadcast %cst : f32 to vector<8x32xf32>
    %cst_0 = arith.constant 0.000000e+00 : f32
    %7 = vector.broadcast %cst_0 : f32 to vector<8x32xf32>
    %c0_i32 = arith.constant 0 : i32
    %c0_i32_1 = arith.constant 0 : i32
    %8 = arith.cmpi eq, %arg0, %c0_i32_1 : i32
    %c7_i32 = arith.constant 7 : i32
    %9 = arith.subi %c7_i32, %c0_i32 : i32
    %10 = arith.select %8, %c0_i32, %9 : i32
    %c0 = arith.constant 0 : index
    %11 = arith.index_cast %10 : i32 to index
    %c0_2 = arith.constant 0 : index
    %c0_3 = arith.constant 0 : index
    %12 = vector.load %arg1[%c0, %11, %c0_2, %c0_3] : memref<1x8x8x128xf32, #tpu.memory_space<vmem>>, vector<1x1x8x128xf32>
    %13 = vector.shape_cast %12 : vector<1x1x8x128xf32> to vector<8x128xf32>
    %14 = arith.truncf %6 : vector<8x32xf32> to vector<8x32xbf16>
    %c0_4 = arith.constant 0 : index
    %c0_5 = arith.constant 0 : index
    %c0_6 = arith.constant 0 : index
    %15 = vector.load %arg2[%c0_4, %c0_5, %c0_6] : memref<1x32x128xbf16, #tpu.memory_space<vmem>>, vector<1x32x128xbf16>
    %16 = vector.shape_cast %15 : vector<1x32x128xbf16> to vector<32x128xbf16>
    %cst_7 = arith.constant dense<0.000000e+00> : vector<8x128xf32>
    %17 = tpu.matmul %14, %16, %cst_7 {dimension_numbers = #tpu.dot_dimension_numbers<[1], [0], [0], [1], [0, 0, 1, 1], [], []>} : vector<8x32xbf16>, vector<32x128xbf16>, vector<8x128xf32> -> vector<8x128xf32>
    %18 = arith.addf %13, %17 : vector<8x128xf32>
    %19 = math.tanh %18 : vector<8x128xf32>
    %20 = arith.negf %18 : vector<8x128xf32>
    %21 = math.exp %20 : vector<8x128xf32>
    %cst_8 = arith.constant 1.000000e+00 : f32
    %22 = vector.broadcast %cst_8 : f32 to vector<8x128xf32>
    %23 = arith.addf %22, %21 : vector<8x128xf32>
    %24 = arith.divf %22, %23 : vector<8x128xf32>
    %25 = arith.select %5, %19, %24 : vector<8x128xi1>, vector<8x128xf32>
    %26 = vector.extract_strided_slice %25 {offsets = [0, 0], sizes = [8, 32], strides = [1, 1]} : vector<8x128xf32> to vector<8x32xf32>
    %27 = vector.extract_strided_slice %25 {offsets = [0, 32], sizes = [8, 32], strides = [1, 1]} : vector<8x128xf32> to vector<8x32xf32>
    %28 = vector.extract_strided_slice %25 {offsets = [0, 64], sizes = [8, 32], strides = [1, 1]} : vector<8x128xf32> to vector<8x32xf32>
    %29 = vector.extract_strided_slice %25 {offsets = [0, 96], sizes = [8, 32], strides = [1, 1]} : vector<8x128xf32> to vector<8x32xf32>
    %30 = arith.mulf %27, %7 : vector<8x32xf32>
    %31 = arith.mulf %26, %28 : vector<8x32xf32>
    %32 = arith.addf %30, %31 : vector<8x32xf32>
    %33 = math.tanh %32 : vector<8x32xf32>
    %34 = arith.mulf %29, %33 : vector<8x32xf32>
    %c0_9 = arith.constant 0 : index
    %35 = arith.index_cast %10 : i32 to index
    %c0_10 = arith.constant 0 : index
    %c0_11 = arith.constant 0 : index
    %36 = vector.load %arg3[%c0_9, %35, %c0_10, %c0_11] : memref<1x8x8x32xf32, #tpu.memory_space<vmem>>, vector<1x1x8x32xf32>
    %37 = vector.shape_cast %36 : vector<1x1x8x32xf32> to vector<8x32xf32>
    %38 = vector.shape_cast %34 : vector<8x32xf32> to vector<1x1x8x32xf32>
    tpu.vector_store %arg3[%c0_9, %35, %c0_10, %c0_11], %38 {strides = array<i32>} : memref<1x8x8x32xf32, #tpu.memory_space<vmem>>, vector<1x1x8x32xf32>,
    %c1_i32 = arith.constant 1 : i32
    %c0_i32_12 = arith.constant 0 : i32
    %39 = arith.cmpi eq, %arg0, %c0_i32_12 : i32
    %c7_i32_13 = arith.constant 7 : i32
    %40 = arith.subi %c7_i32_13, %c1_i32 : i32
    %41 = arith.select %39, %c1_i32, %40 : i32
    %c0_14 = arith.constant 0 : index
    %42 = arith.index_cast %41 : i32 to index
    %c0_15 = arith.constant 0 : index
    %c0_16 = arith.constant 0 : index
    %43 = vector.load %arg1[%c0_14, %42, %c0_15, %c0_16] : memref<1x8x8x128xf32, #tpu.memory_space<vmem>>, vector<1x1x8x128xf32>
    %44 = vector.shape_cast %43 : vector<1x1x8x128xf32> to vector<8x128xf32>
    %45 = arith.truncf %34 : vector<8x32xf32> to vector<8x32xbf16>
    %c0_17 = arith.constant 0 : index
    %c0_18 = arith.constant 0 : index
    %c0_19 = arith.constant 0 : index
    %46 = vector.load %arg2[%c0_17, %c0_18, %c0_19] : memref<1x32x128xbf16, #tpu.memory_space<vmem>>, vector<1x32x128xbf16>
    %47 = vector.shape_cast %46 : vector<1x32x128xbf16> to vector<32x128xbf16>
    %cst_20 = arith.constant dense<0.000000e+00> : vector<8x128xf32>
    %48 = tpu.matmul %45, %47, %cst_20 {dimension_numbers = #tpu.dot_dimension_numbers<[1], [0], [0], [1], [0, 0, 1, 1], [], []>} : vector<8x32xbf16>, vector<32x128xbf16>, vector<8x128xf32> -> vector<8x128xf32>
    %49 = arith.addf %44, %48 : vector<8x128xf32>
    %50 = math.tanh %49 : vector<8x128xf32>
    %51 = arith.negf %49 : vector<8x128xf32>
    %52 = math.exp %51 : vector<8x128xf32>
    %cst_21 = arith.constant 1.000000e+00 : f32
    %53 = vector.broadcast %cst_21 : f32 to vector<8x128xf32>
    %54 = arith.addf %53, %52 : vector<8x128xf32>
    %55 = arith.divf %53, %54 : vector<8x128xf32>
    %56 = arith.select %5, %50, %55 : vector<8x128xi1>, vector<8x128xf32>
    %57 = vector.extract_strided_slice %56 {offsets = [0, 0], sizes = [8, 32], strides = [1, 1]} : vector<8x128xf32> to vector<8x32xf32>
    %58 = vector.extract_strided_slice %56 {offsets = [0, 32], sizes = [8, 32], strides = [1, 1]} : vector<8x128xf32> to vector<8x32xf32>
    %59 = vector.extract_strided_slice %56 {offsets = [0, 64], sizes = [8, 32], strides = [1, 1]} : vector<8x128xf32> to vector<8x32xf32>
    %60 = vector.extract_strided_slice %56 {offsets = [0, 96], sizes = [8, 32], strides = [1, 1]} : vector<8x128xf32> to vector<8x32xf32>
    %61 = arith.mulf %58, %32 : vector<8x32xf32>
    %62 = arith.mulf %57, %59 : vector<8x32xf32>
    %63 = arith.addf %61, %62 : vector<8x32xf32>
    %64 = math.tanh %63 : vector<8x32xf32>
    %65 = arith.mulf %60, %64 : vector<8x32xf32>
    %c0_22 = arith.constant 0 : index
    %66 = arith.index_cast %41 : i32 to index
    %c0_23 = arith.constant 0 : index
    %c0_24 = arith.constant 0 : index
    %67 = vector.load %arg3[%c0_22, %66, %c0_23, %c0_24] : memref<1x8x8x32xf32, #tpu.memory_space<vmem>>, vector<1x1x8x32xf32>
    %68 = vector.shape_cast %67 : vector<1x1x8x32xf32> to vector<8x32xf32>
    %69 = vector.shape_cast %65 : vector<8x32xf32> to vector<1x1x8x32xf32>
    tpu.vector_store %arg3[%c0_22, %66, %c0_23, %c0_24], %69 {strides = array<i32>} : memref<1x8x8x32xf32, #tpu.memory_space<vmem>>, vector<1x1x8x32xf32>,
    %c2_i32 = arith.constant 2 : i32
    %c0_i32_25 = arith.constant 0 : i32
    %70 = arith.cmpi eq, %arg0, %c0_i32_25 : i32
    %c7_i32_26 = arith.constant 7 : i32
    %71 = arith.subi %c7_i32_26, %c2_i32 : i32
    %72 = arith.select %70, %c2_i32, %71 : i32
    %c0_27 = arith.constant 0 : index
    %73 = arith.index_cast %72 : i32 to index
    %c0_28 = arith.constant 0 : index
    %c0_29 = arith.constant 0 : index
    %74 = vector.load %arg1[%c0_27, %73, %c0_28, %c0_29] : memref<1x8x8x128xf32, #tpu.memory_space<vmem>>, vector<1x1x8x128xf32>
    %75 = vector.shape_cast %74 : vector<1x1x8x128xf32> to vector<8x128xf32>
    %76 = arith.truncf %65 : vector<8x32xf32> to vector<8x32xbf16>
    %c0_30 = arith.constant 0 : index
    %c0_31 = arith.constant 0 : index
    %c0_32 = arith.constant 0 : index
    %77 = vector.load %arg2[%c0_30, %c0_31, %c0_32] : memref<1x32x128xbf16, #tpu.memory_space<vmem>>, vector<1x32x128xbf16>
    %78 = vector.shape_cast %77 : vector<1x32x128xbf16> to vector<32x128xbf16>
    %cst_33 = arith.constant dense<0.000000e+00> : vector<8x128xf32>
    %79 = tpu.matmul %76, %78, %cst_33 {dimension_numbers = #tpu.dot_dimension_numbers<[1], [0], [0], [1], [0, 0, 1, 1], [], []>} : vector<8x32xbf16>, vector<32x128xbf16>, vector<8x128xf32> -> vector<8x128xf32>
    %80 = arith.addf %75, %79 : vector<8x128xf32>
    %81 = math.tanh %80 : vector<8x128xf32>
    %82 = arith.negf %80 : vector<8x128xf32>
    %83 = math.exp %82 : vector<8x128xf32>
    %cst_34 = arith.constant 1.000000e+00 : f32
    %84 = vector.broadcast %cst_34 : f32 to vector<8x128xf32>
    %85 = arith.addf %84, %83 : vector<8x128xf32>
    %86 = arith.divf %84, %85 : vector<8x128xf32>
    %87 = arith.select %5, %81, %86 : vector<8x128xi1>, vector<8x128xf32>
    %88 = vector.extract_strided_slice %87 {offsets = [0, 0], sizes = [8, 32], strides = [1, 1]} : vector<8x128xf32> to vector<8x32xf32>
    %89 = vector.extract_strided_slice %87 {offsets = [0, 32], sizes = [8, 32], strides = [1, 1]} : vector<8x128xf32> to vector<8x32xf32>
    %90 = vector.extract_strided_slice %87 {offsets = [0, 64], sizes = [8, 32], strides = [1, 1]} : vector<8x128xf32> to vector<8x32xf32>
    %91 = vector.extract_strided_slice %87 {offsets = [0, 96], sizes = [8, 32], strides = [1, 1]} : vector<8x128xf32> to vector<8x32xf32>
    %92 = arith.mulf %89, %63 : vector<8x32xf32>
    %93 = arith.mulf %88, %90 : vector<8x32xf32>
    %94 = arith.addf %92, %93 : vector<8x32xf32>
    %95 = math.tanh %94 : vector<8x32xf32>
    %96 = arith.mulf %91, %95 : vector<8x32xf32>
    %c0_35 = arith.constant 0 : index
    %97 = arith.index_cast %72 : i32 to index
    %c0_36 = arith.constant 0 : index
    %c0_37 = arith.constant 0 : index
    %98 = vector.load %arg3[%c0_35, %97, %c0_36, %c0_37] : memref<1x8x8x32xf32, #tpu.memory_space<vmem>>, vector<1x1x8x32xf32>
    %99 = vector.shape_cast %98 : vector<1x1x8x32xf32> to vector<8x32xf32>
    %100 = vector.shape_cast %96 : vector<8x32xf32> to vector<1x1x8x32xf32>
    tpu.vector_store %arg3[%c0_35, %97, %c0_36, %c0_37], %100 {strides = array<i32>} : memref<1x8x8x32xf32, #tpu.memory_space<vmem>>, vector<1x1x8x32xf32>,
    %c3_i32 = arith.constant 3 : i32
    %c0_i32_38 = arith.constant 0 : i32
    %101 = arith.cmpi eq, %arg0, %c0_i32_38 : i32
    %c7_i32_39 = arith.constant 7 : i32
    %102 = arith.subi %c7_i32_39, %c3_i32 : i32
    %103 = arith.select %101, %c3_i32, %102 : i32
    %c0_40 = arith.constant 0 : index
    %104 = arith.index_cast %103 : i32 to index
    %c0_41 = arith.constant 0 : index
    %c0_42 = arith.constant 0 : index
    %105 = vector.load %arg1[%c0_40, %104, %c0_41, %c0_42] : memref<1x8x8x128xf32, #tpu.memory_space<vmem>>, vector<1x1x8x128xf32>
    %106 = vector.shape_cast %105 : vector<1x1x8x128xf32> to vector<8x128xf32>
    %107 = arith.truncf %96 : vector<8x32xf32> to vector<8x32xbf16>
    %c0_43 = arith.constant 0 : index
    %c0_44 = arith.constant 0 : index
    %c0_45 = arith.constant 0 : index
    %108 = vector.load %arg2[%c0_43, %c0_44, %c0_45] : memref<1x32x128xbf16, #tpu.memory_space<vmem>>, vector<1x32x128xbf16>
    %109 = vector.shape_cast %108 : vector<1x32x128xbf16> to vector<32x128xbf16>
    %cst_46 = arith.constant dense<0.000000e+00> : vector<8x128xf32>
    %110 = tpu.matmul %107, %109, %cst_46 {dimension_numbers = #tpu.dot_dimension_numbers<[1], [0], [0], [1], [0, 0, 1, 1], [], []>} : vector<8x32xbf16>, vector<32x128xbf16>, vector<8x128xf32> -> vector<8x128xf32>
    %111 = arith.addf %106, %110 : vector<8x128xf32>
    %112 = math.tanh %111 : vector<8x128xf32>
    %113 = arith.negf %111 : vector<8x128xf32>
    %114 = math.exp %113 : vector<8x128xf32>
    %cst_47 = arith.constant 1.000000e+00 : f32
    %115 = vector.broadcast %cst_47 : f32 to vector<8x128xf32>
    %116 = arith.addf %115, %114 : vector<8x128xf32>
    %117 = arith.divf %115, %116 : vector<8x128xf32>
    %118 = arith.select %5, %112, %117 : vector<8x128xi1>, vector<8x128xf32>
    %119 = vector.extract_strided_slice %118 {offsets = [0, 0], sizes = [8, 32], strides = [1, 1]} : vector<8x128xf32> to vector<8x32xf32>
    %120 = vector.extract_strided_slice %118 {offsets = [0, 32], sizes = [8, 32], strides = [1, 1]} : vector<8x128xf32> to vector<8x32xf32>
    %121 = vector.extract_strided_slice %118 {offsets = [0, 64], sizes = [8, 32], strides = [1, 1]} : vector<8x128xf32> to vector<8x32xf32>
    %122 = vector.extract_strided_slice %118 {offsets = [0, 96], sizes = [8, 32], strides = [1, 1]} : vector<8x128xf32> to vector<8x32xf32>
    %123 = arith.mulf %120, %94 : vector<8x32xf32>
    %124 = arith.mulf %119, %121 : vector<8x32xf32>
    %125 = arith.addf %123, %124 : vector<8x32xf32>
    %126 = math.tanh %125 : vector<8x32xf32>
    %127 = arith.mulf %122, %126 : vector<8x32xf32>
    %c0_48 = arith.constant 0 : index
    %128 = arith.index_cast %103 : i32 to index
    %c0_49 = arith.constant 0 : index
    %c0_50 = arith.constant 0 : index
    %129 = vector.load %arg3[%c0_48, %128, %c0_49, %c0_50] : memref<1x8x8x32xf32, #tpu.memory_space<vmem>>, vector<1x1x8x32xf32>
    %130 = vector.shape_cast %129 : vector<1x1x8x32xf32> to vector<8x32xf32>
    %131 = vector.shape_cast %127 : vector<8x32xf32> to vector<1x1x8x32xf32>
    tpu.vector_store %arg3[%c0_48, %128, %c0_49, %c0_50], %131 {strides = array<i32>} : memref<1x8x8x32xf32, #tpu.memory_space<vmem>>, vector<1x1x8x32xf32>,
    %c4_i32 = arith.constant 4 : i32
    %c0_i32_51 = arith.constant 0 : i32
    %132 = arith.cmpi eq, %arg0, %c0_i32_51 : i32
    %c7_i32_52 = arith.constant 7 : i32
    %133 = arith.subi %c7_i32_52, %c4_i32 : i32
    %134 = arith.select %132, %c4_i32, %133 : i32
    %c0_53 = arith.constant 0 : index
    %135 = arith.index_cast %134 : i32 to index
    %c0_54 = arith.constant 0 : index
    %c0_55 = arith.constant 0 : index
    %136 = vector.load %arg1[%c0_53, %135, %c0_54, %c0_55] : memref<1x8x8x128xf32, #tpu.memory_space<vmem>>, vector<1x1x8x128xf32>
    %137 = vector.shape_cast %136 : vector<1x1x8x128xf32> to vector<8x128xf32>
    %138 = arith.truncf %127 : vector<8x32xf32> to vector<8x32xbf16>
    %c0_56 = arith.constant 0 : index
    %c0_57 = arith.constant 0 : index
    %c0_58 = arith.constant 0 : index
    %139 = vector.load %arg2[%c0_56, %c0_57, %c0_58] : memref<1x32x128xbf16, #tpu.memory_space<vmem>>, vector<1x32x128xbf16>
    %140 = vector.shape_cast %139 : vector<1x32x128xbf16> to vector<32x128xbf16>
    %cst_59 = arith.constant dense<0.000000e+00> : vector<8x128xf32>
    %141 = tpu.matmul %138, %140, %cst_59 {dimension_numbers = #tpu.dot_dimension_numbers<[1], [0], [0], [1], [0, 0, 1, 1], [], []>} : vector<8x32xbf16>, vector<32x128xbf16>, vector<8x128xf32> -> vector<8x128xf32>
    %142 = arith.addf %137, %141 : vector<8x128xf32>
    %143 = math.tanh %142 : vector<8x128xf32>
    %144 = arith.negf %142 : vector<8x128xf32>
    %145 = math.exp %144 : vector<8x128xf32>
    %cst_60 = arith.constant 1.000000e+00 : f32
    %146 = vector.broadcast %cst_60 : f32 to vector<8x128xf32>
    %147 = arith.addf %146, %145 : vector<8x128xf32>
    %148 = arith.divf %146, %147 : vector<8x128xf32>
    %149 = arith.select %5, %143, %148 : vector<8x128xi1>, vector<8x128xf32>
    %150 = vector.extract_strided_slice %149 {offsets = [0, 0], sizes = [8, 32], strides = [1, 1]} : vector<8x128xf32> to vector<8x32xf32>
    %151 = vector.extract_strided_slice %149 {offsets = [0, 32], sizes = [8, 32], strides = [1, 1]} : vector<8x128xf32> to vector<8x32xf32>
    %152 = vector.extract_strided_slice %149 {offsets = [0, 64], sizes = [8, 32], strides = [1, 1]} : vector<8x128xf32> to vector<8x32xf32>
    %153 = vector.extract_strided_slice %149 {offsets = [0, 96], sizes = [8, 32], strides = [1, 1]} : vector<8x128xf32> to vector<8x32xf32>
    %154 = arith.mulf %151, %125 : vector<8x32xf32>
    %155 = arith.mulf %150, %152 : vector<8x32xf32>
    %156 = arith.addf %154, %155 : vector<8x32xf32>
    %157 = math.tanh %156 : vector<8x32xf32>
    %158 = arith.mulf %153, %157 : vector<8x32xf32>
    %c0_61 = arith.constant 0 : index
    %159 = arith.index_cast %134 : i32 to index
    %c0_62 = arith.constant 0 : index
    %c0_63 = arith.constant 0 : index
    %160 = vector.load %arg3[%c0_61, %159, %c0_62, %c0_63] : memref<1x8x8x32xf32, #tpu.memory_space<vmem>>, vector<1x1x8x32xf32>
    %161 = vector.shape_cast %160 : vector<1x1x8x32xf32> to vector<8x32xf32>
    %162 = vector.shape_cast %158 : vector<8x32xf32> to vector<1x1x8x32xf32>
    tpu.vector_store %arg3[%c0_61, %159, %c0_62, %c0_63], %162 {strides = array<i32>} : memref<1x8x8x32xf32, #tpu.memory_space<vmem>>, vector<1x1x8x32xf32>,
    %c5_i32 = arith.constant 5 : i32
    %c0_i32_64 = arith.constant 0 : i32
    %163 = arith.cmpi eq, %arg0, %c0_i32_64 : i32
    %c7_i32_65 = arith.constant 7 : i32
    %164 = arith.subi %c7_i32_65, %c5_i32 : i32
    %165 = arith.select %163, %c5_i32, %164 : i32
    %c0_66 = arith.constant 0 : index
    %166 = arith.index_cast %165 : i32 to index
    %c0_67 = arith.constant 0 : index
    %c0_68 = arith.constant 0 : index
    %167 = vector.load %arg1[%c0_66, %166, %c0_67, %c0_68] : memref<1x8x8x128xf32, #tpu.memory_space<vmem>>, vector<1x1x8x128xf32>
    %168 = vector.shape_cast %167 : vector<1x1x8x128xf32> to vector<8x128xf32>
    %169 = arith.truncf %158 : vector<8x32xf32> to vector<8x32xbf16>
    %c0_69 = arith.constant 0 : index
    %c0_70 = arith.constant 0 : index
    %c0_71 = arith.constant 0 : index
    %170 = vector.load %arg2[%c0_69, %c0_70, %c0_71] : memref<1x32x128xbf16, #tpu.memory_space<vmem>>, vector<1x32x128xbf16>
    %171 = vector.shape_cast %170 : vector<1x32x128xbf16> to vector<32x128xbf16>
    %cst_72 = arith.constant dense<0.000000e+00> : vector<8x128xf32>
    %172 = tpu.matmul %169, %171, %cst_72 {dimension_numbers = #tpu.dot_dimension_numbers<[1], [0], [0], [1], [0, 0, 1, 1], [], []>} : vector<8x32xbf16>, vector<32x128xbf16>, vector<8x128xf32> -> vector<8x128xf32>
    %173 = arith.addf %168, %172 : vector<8x128xf32>
    %174 = math.tanh %173 : vector<8x128xf32>
    %175 = arith.negf %173 : vector<8x128xf32>
    %176 = math.exp %175 : vector<8x128xf32>
    %cst_73 = arith.constant 1.000000e+00 : f32
    %177 = vector.broadcast %cst_73 : f32 to vector<8x128xf32>
    %178 = arith.addf %177, %176 : vector<8x128xf32>
    %179 = arith.divf %177, %178 : vector<8x128xf32>
    %180 = arith.select %5, %174, %179 : vector<8x128xi1>, vector<8x128xf32>
    %181 = vector.extract_strided_slice %180 {offsets = [0, 0], sizes = [8, 32], strides = [1, 1]} : vector<8x128xf32> to vector<8x32xf32>
    %182 = vector.extract_strided_slice %180 {offsets = [0, 32], sizes = [8, 32], strides = [1, 1]} : vector<8x128xf32> to vector<8x32xf32>
    %183 = vector.extract_strided_slice %180 {offsets = [0, 64], sizes = [8, 32], strides = [1, 1]} : vector<8x128xf32> to vector<8x32xf32>
    %184 = vector.extract_strided_slice %180 {offsets = [0, 96], sizes = [8, 32], strides = [1, 1]} : vector<8x128xf32> to vector<8x32xf32>
    %185 = arith.mulf %182, %156 : vector<8x32xf32>
    %186 = arith.mulf %181, %183 : vector<8x32xf32>
    %187 = arith.addf %185, %186 : vector<8x32xf32>
    %188 = math.tanh %187 : vector<8x32xf32>
    %189 = arith.mulf %184, %188 : vector<8x32xf32>
    %c0_74 = arith.constant 0 : index
    %190 = arith.index_cast %165 : i32 to index
    %c0_75 = arith.constant 0 : index
    %c0_76 = arith.constant 0 : index
    %191 = vector.load %arg3[%c0_74, %190, %c0_75, %c0_76] : memref<1x8x8x32xf32, #tpu.memory_space<vmem>>, vector<1x1x8x32xf32>
    %192 = vector.shape_cast %191 : vector<1x1x8x32xf32> to vector<8x32xf32>
    %193 = vector.shape_cast %189 : vector<8x32xf32> to vector<1x1x8x32xf32>
    tpu.vector_store %arg3[%c0_74, %190, %c0_75, %c0_76], %193 {strides = array<i32>} : memref<1x8x8x32xf32, #tpu.memory_space<vmem>>, vector<1x1x8x32xf32>,
    %c6_i32 = arith.constant 6 : i32
    %c0_i32_77 = arith.constant 0 : i32
    %194 = arith.cmpi eq, %arg0, %c0_i32_77 : i32
    %c7_i32_78 = arith.constant 7 : i32
    %195 = arith.subi %c7_i32_78, %c6_i32 : i32
    %196 = arith.select %194, %c6_i32, %195 : i32
    %c0_79 = arith.constant 0 : index
    %197 = arith.index_cast %196 : i32 to index
    %c0_80 = arith.constant 0 : index
    %c0_81 = arith.constant 0 : index
    %198 = vector.load %arg1[%c0_79, %197, %c0_80, %c0_81] : memref<1x8x8x128xf32, #tpu.memory_space<vmem>>, vector<1x1x8x128xf32>
    %199 = vector.shape_cast %198 : vector<1x1x8x128xf32> to vector<8x128xf32>
    %200 = arith.truncf %189 : vector<8x32xf32> to vector<8x32xbf16>
    %c0_82 = arith.constant 0 : index
    %c0_83 = arith.constant 0 : index
    %c0_84 = arith.constant 0 : index
    %201 = vector.load %arg2[%c0_82, %c0_83, %c0_84] : memref<1x32x128xbf16, #tpu.memory_space<vmem>>, vector<1x32x128xbf16>
    %202 = vector.shape_cast %201 : vector<1x32x128xbf16> to vector<32x128xbf16>
    %cst_85 = arith.constant dense<0.000000e+00> : vector<8x128xf32>
    %203 = tpu.matmul %200, %202, %cst_85 {dimension_numbers = #tpu.dot_dimension_numbers<[1], [0], [0], [1], [0, 0, 1, 1], [], []>} : vector<8x32xbf16>, vector<32x128xbf16>, vector<8x128xf32> -> vector<8x128xf32>
    %204 = arith.addf %199, %203 : vector<8x128xf32>
    %205 = math.tanh %204 : vector<8x128xf32>
    %206 = arith.negf %204 : vector<8x128xf32>
    %207 = math.exp %206 : vector<8x128xf32>
    %cst_86 = arith.constant 1.000000e+00 : f32
    %208 = vector.broadcast %cst_86 : f32 to vector<8x128xf32>
    %209 = arith.addf %208, %207 : vector<8x128xf32>
    %210 = arith.divf %208, %209 : vector<8x128xf32>
    %211 = arith.select %5, %205, %210 : vector<8x128xi1>, vector<8x128xf32>
    %212 = vector.extract_strided_slice %211 {offsets = [0, 0], sizes = [8, 32], strides = [1, 1]} : vector<8x128xf32> to vector<8x32xf32>
    %213 = vector.extract_strided_slice %211 {offsets = [0, 32], sizes = [8, 32], strides = [1, 1]} : vector<8x128xf32> to vector<8x32xf32>
    %214 = vector.extract_strided_slice %211 {offsets = [0, 64], sizes = [8, 32], strides = [1, 1]} : vector<8x128xf32> to vector<8x32xf32>
    %215 = vector.extract_strided_slice %211 {offsets = [0, 96], sizes = [8, 32], strides = [1, 1]} : vector<8x128xf32> to vector<8x32xf32>
    %216 = arith.mulf %213, %187 : vector<8x32xf32>
    %217 = arith.mulf %212, %214 : vector<8x32xf32>
    %218 = arith.addf %216, %217 : vector<8x32xf32>
    %219 = math.tanh %218 : vector<8x32xf32>
    %220 = arith.mulf %215, %219 : vector<8x32xf32>
    %c0_87 = arith.constant 0 : index
    %221 = arith.index_cast %196 : i32 to index
    %c0_88 = arith.constant 0 : index
    %c0_89 = arith.constant 0 : index
    %222 = vector.load %arg3[%c0_87, %221, %c0_88, %c0_89] : memref<1x8x8x32xf32, #tpu.memory_space<vmem>>, vector<1x1x8x32xf32>
    %223 = vector.shape_cast %222 : vector<1x1x8x32xf32> to vector<8x32xf32>
    %224 = vector.shape_cast %220 : vector<8x32xf32> to vector<1x1x8x32xf32>
    tpu.vector_store %arg3[%c0_87, %221, %c0_88, %c0_89], %224 {strides = array<i32>} : memref<1x8x8x32xf32, #tpu.memory_space<vmem>>, vector<1x1x8x32xf32>,
    %c7_i32_90 = arith.constant 7 : i32
    %c0_i32_91 = arith.constant 0 : i32
    %225 = arith.cmpi eq, %arg0, %c0_i32_91 : i32
    %c7_i32_92 = arith.constant 7 : i32
    %226 = arith.subi %c7_i32_92, %c7_i32_90 : i32
    %227 = arith.select %225, %c7_i32_90, %226 : i32
    %c0_93 = arith.constant 0 : index
    %228 = arith.index_cast %227 : i32 to index
    %c0_94 = arith.constant 0 : index
    %c0_95 = arith.constant 0 : index
    %229 = vector.load %arg1[%c0_93, %228, %c0_94, %c0_95] : memref<1x8x8x128xf32, #tpu.memory_space<vmem>>, vector<1x1x8x128xf32>
    %230 = vector.shape_cast %229 : vector<1x1x8x128xf32> to vector<8x128xf32>
    %231 = arith.truncf %220 : vector<8x32xf32> to vector<8x32xbf16>
    %c0_96 = arith.constant 0 : index
    %c0_97 = arith.constant 0 : index
    %c0_98 = arith.constant 0 : index
    %232 = vector.load %arg2[%c0_96, %c0_97, %c0_98] : memref<1x32x128xbf16, #tpu.memory_space<vmem>>, vector<1x32x128xbf16>
    %233 = vector.shape_cast %232 : vector<1x32x128xbf16> to vector<32x128xbf16>
    %cst_99 = arith.constant dense<0.000000e+00> : vector<8x128xf32>
    %234 = tpu.matmul %231, %233, %cst_99 {dimension_numbers = #tpu.dot_dimension_numbers<[1], [0], [0], [1], [0, 0, 1, 1], [], []>} : vector<8x32xbf16>, vector<32x128xbf16>, vector<8x128xf32> -> vector<8x128xf32>
    %235 = arith.addf %230, %234 : vector<8x128xf32>
    %236 = math.tanh %235 : vector<8x128xf32>
    %237 = arith.negf %235 : vector<8x128xf32>
    %238 = math.exp %237 : vector<8x128xf32>
    %cst_100 = arith.constant 1.000000e+00 : f32
    %239 = vector.broadcast %cst_100 : f32 to vector<8x128xf32>
    %240 = arith.addf %239, %238 : vector<8x128xf32>
    %241 = arith.divf %239, %240 : vector<8x128xf32>
    %242 = arith.select %5, %236, %241 : vector<8x128xi1>, vector<8x128xf32>
    %243 = vector.extract_strided_slice %242 {offsets = [0, 0], sizes = [8, 32], strides = [1, 1]} : vector<8x128xf32> to vector<8x32xf32>
    %244 = vector.extract_strided_slice %242 {offsets = [0, 32], sizes = [8, 32], strides = [1, 1]} : vector<8x128xf32> to vector<8x32xf32>
    %245 = vector.extract_strided_slice %242 {offsets = [0, 64], sizes = [8, 32], strides = [1, 1]} : vector<8x128xf32> to vector<8x32xf32>
    %246 = vector.extract_strided_slice %242 {offsets = [0, 96], sizes = [8, 32], strides = [1, 1]} : vector<8x128xf32> to vector<8x32xf32>
    %247 = arith.mulf %244, %218 : vector<8x32xf32>
    %248 = arith.mulf %243, %245 : vector<8x32xf32>
    %249 = arith.addf %247, %248 : vector<8x32xf32>
    %250 = math.tanh %249 : vector<8x32xf32>
    %251 = arith.mulf %246, %250 : vector<8x32xf32>
    %c0_101 = arith.constant 0 : index
    %252 = arith.index_cast %227 : i32 to index
    %c0_102 = arith.constant 0 : index
    %c0_103 = arith.constant 0 : index
    %253 = vector.load %arg3[%c0_101, %252, %c0_102, %c0_103] : memref<1x8x8x32xf32, #tpu.memory_space<vmem>>, vector<1x1x8x32xf32>
    %254 = vector.shape_cast %253 : vector<1x1x8x32xf32> to vector<8x32xf32>
    %255 = vector.shape_cast %251 : vector<8x32xf32> to vector<1x1x8x32xf32>
    tpu.vector_store %arg3[%c0_101, %252, %c0_102, %c0_103], %255 {strides = array<i32>} : memref<1x8x8x32xf32, #tpu.memory_space<vmem>>, vector<1x1x8x32xf32>,
    %c8_i32 = arith.constant 8 : i32
    %c0_104 = arith.constant 0 : index
    %c0_105 = arith.constant 0 : index
    %c0_106 = arith.constant 0 : index
    %256 = vector.load %arg4[%c0_104, %c0_105, %c0_106] : memref<1x8x32xf32, #tpu.memory_space<vmem>>, vector<1x8x32xf32>
    %257 = vector.shape_cast %256 : vector<1x8x32xf32> to vector<8x32xf32>
    %258 = vector.shape_cast %251 : vector<8x32xf32> to vector<1x8x32xf32>
    tpu.vector_store %arg4[%c0_104, %c0_105, %c0_106], %258 {strides = array<i32>} : memref<1x8x32xf32, #tpu.memory_space<vmem>>, vector<1x8x32xf32>,
    return
  }
  func.func @transform_0(%arg0: i32) -> (i32, i32, i32, i32) {
    %c0_i32 = arith.constant 0 : i32
    %c0_i32_0 = arith.constant 0 : i32
    %c0_i32_1 = arith.constant 0 : i32
    %c0_i32_2 = arith.constant 0 : i32
    return %arg0, %c0_i32, %c0_i32_0, %c0_i32_1 : i32, i32, i32, i32
  }
  func.func @transform_1(%arg0: i32) -> (i32, i32, i32) {
    %c0_i32 = arith.constant 0 : i32
    %c0_i32_0 = arith.constant 0 : i32
    %c0_i32_1 = arith.constant 0 : i32
    return %arg0, %c0_i32, %c0_i32_0 : i32, i32, i32
  }
  func.func @transform_2(%arg0: i32) -> (i32, i32, i32, i32) {
    %c0_i32 = arith.constant 0 : i32
    %c0_i32_0 = arith.constant 0 : i32
    %c0_i32_1 = arith.constant 0 : i32
    %c0_i32_2 = arith.constant 0 : i32
    return %arg0, %c0_i32, %c0_i32_0, %c0_i32_1 : i32, i32, i32, i32
  }
  func.func @transform_3(%arg0: i32) -> (i32, i32, i32) {
    %c0_i32 = arith.constant 0 : i32
    %c0_i32_0 = arith.constant 0 : i32
    %c0_i32_1 = arith.constant 0 : i32
    return %arg0, %c0_i32, %c0_i32_0 : i32, i32, i32
  }
}

</mosaic_0001>

<bundles_post_ra>
// kernel: rnn_forward.3
= control target key start
LH: loop header
LB: loop body
LE: loop exit
PB: predicated region body
PF: predicated region fallthrough
CT: control target
= control target key end

     0   :  { %9 = vsyncpa [#allocation3], 0  ;;  %s1878_s0 = inlined_call_operand.vmem [shape: f32[2,8,8,128], index: 0, kind: input, shape index: {}]   ;;  %s1879_s1 = inlined_call_operand.vmem [shape: bf16[2,32,128], index: 1, kind: input, shape index: {}]   ;;  %s1880_s2 = inlined_call_operand.hbm [shape: f32[2,8,8,32], index: 2, kind: output, shape index: {0}]   ;;  %s1881_s3 = inlined_call_operand.vmem [shape: f32[2,8,32], index: 3, kind: output, shape index: {1}]  }
   0x1   :  { %11 = vsyncpa [#allocation3 + $0x1], 0  ;;  %s1511_s12 = smov 0   ;;  %s1513_s13 = smov 0  }
   0x2   :  { %s1515_s14 = smov 0   ;;  %s1517_s15 = smov 0  }
   0x3 LB: > { %s1532_s16 = sadd.s32 4294967295, %s1481_s15   ;;  %s1148_s17 = sadd.s32 4294967294, %s1481_s15   ;;  %s1481_s15 = sphi %s1517_s15, %s1903_s15   ;;  %s1477_s14 = sphi %s1515_s14, %s1902_s14   ;;  %s1473_s13 = sphi %s1513_s13, %s1901_s13   ;;  %s1469_s12 = sphi %s1511_s12, %s1900_s12  }
   0x4   : > { %s1536_s18 = sadd.s32 1, %s1481_s15   ;;  %s76_s19 = sadd.s32 1, %s1477_s14 }
   0x5   : > { %s73_s20 = ssub.s32 %s1481_s15, %s1536_s18  ;;  %p86_p0 = scmp.ne.s32.totalorder %s1477_s14, %s1473_s13 }
   0x6   : > { %p74_p1 = scmp.eq.s32.totalorder %s73_s20, 0  ;;  %p87_p2 = scmp.eq.s32.totalorder %s1532_s16, 1 }
   0x7   : > { %p92_p3 = scmp.ne.s32.totalorder %s1473_s13, %s1469_s12  ;;  %p93_p4 = scmp.eq.s32.totalorder %s1148_s17, 1 }
   0x8   : > { %s1547_s21 = scalar_select %p74_p1, %s1477_s14, %s76_s19  }
   0x9   : > { %p1549_p5 = por %p87_p2, %p86_p0  ;;  %p1553_p6 = por %p93_p4, %p92_p3 }
   0xa   : > { %p1151_p7 = scmp.ge.s32.totalorder %s1481_s15, 1  ;;  %p153_p8 = scmp.lt.s32.totalorder %s1481_s15, 3 }
   0xc   : > { %p154_p9 = pnand %p1151_p7, %p153_p8 }
   0xd   : > { %p186_p10 = scmp.lt.s32.totalorder (!%p154_p9), %s1532_s16, 1  ;;  %v1483_v0 = vmov (!%p154_p9), 0.0   ;;  %vm1484_vm0 = vmmov (!%p154_p9), 0   ;;  %v1485_v3 = vmov (!%p154_p9), 0   ;;  %p206_p11 = scmp.eq.s32.totalorder (!%p154_p9), %s1532_s16, 0  ;;  %v201_v12 = vlaneseq (!%p154_p9) }
   0xe   : > { %157 = sbr.rel (%p154_p9) target bundleno = 5806 (0x16ae), region = 28  ;;  %1229 = vmatprep.subr.bf16.mxu0 (!%p154_p9), %v1483_v0  ;;  %1233 = vmatprep.mubr.msk.bf16.mxu0 (!%p154_p9), %vm1484_vm0, %v1483_v0  ;;  %s1486_s9 = smov (!%p154_p9), 64   ;;  %vm227_vm4 = vcmask (!%p154_p9), 261120  }
   0xf   : > { %1237 = vmatprep.subr.bf16.mxu1 (!%p154_p9), %v1483_v0  ;;  %1241 = vmatprep.mubr.msk.bf16.mxu1 (!%p154_p9), %vm1484_vm0, %v1483_v0  ;;  %v202_v14 = vand.u32 (!%p154_p9), 127, %v201_v12  ;;  %s1487_s10 = smov (!%p154_p9), 32  }
  0x11   : > { %vm203_vm1 = vcmp.ge.s32.totalorder (!%p154_p9), %v202_v14, 64  ;;  %vm204_vm2 = vcmp.lt.s32.totalorder (!%p154_p9), %v202_v14, 96 }
  0x12   : > { %vm1596_vm3 = vmand (!%p154_p9), %vm203_vm1, %vm204_vm2 }
  0x15   : > { %s1564_s24 = scalar_select %p186_p10, %s1532_s16, 1 }
  0x16   : > { %s1584_s29 = scalar_select %p206_p11, 0, 7 }
  0x17   : > { %s1203_s25 = sshll.u32 %s1564_s24, 4  ;;  %s1202_s30 = sshll.u32 %s1564_s24, 6 }
  0x18   : > { %s1573_s28 = scalar_lea.vmem %s1879_s1, %s1203_s25  ;;  %s1590_s6 = scalar_lea.vmem %s1878_s0, %s1202_s30 }
  0x19   : > { %v1339_v1 = vld [vmem:[%s1573_s28] sm:$0xff]   ;;  %v1340_v2 = vld [vmem:[%s1573_s28 + $0x8] sm:$0xff]   ;;  %s1158_s7 = sshll.u32 %s1584_s29, 3 }
  0x1a   : > { %1230 = vmatpush3.bf16.msra.mxu0 %v1339_v1  ;;  %s209_s8 = scalar_lea.vmem %s1590_s6, %s1158_s7  ;;  %v1341_v24 = vld [vmem:[%s1573_s28] sm:$0xff]   ;;  %v1342_v25 = vld [vmem:[%s1573_s28 + $0x8] sm:$0xff]  }
  0x1b   : > { %1231 = vmatprep.subr.bf16.mxu0 %v1483_v0  ;;  %v210_v4 = vld [vmem:[%s209_s8] sm:$0xff]  ;;  %1238 = vmatpush3.bf16.msra.mxu1 %v1341_v24  ;;  %s1619_s11 = scalar_select %p206_p11, 1, 6  ;;  %v1344_v49 = vld [vmem:[%s1573_s28 + $0x8] sm:$0xff]  }
  0x1c   : > { %1239 = vmatprep.subr.bf16.mxu1 %v1483_v0  ;;  %v1343_v48 = vld [vmem:[%s1573_s28] sm:$0xff]   ;;  %s1644_s20 = scalar_select %p206_p11, 2, 5 }
  0x1d   : > { %s1887_s17 = sshll.u32 %s1619_s11, 3  ;;  %s1893_s29 = sshll.u32 %s1619_s11, 3 }
  0x1e   : > { %1232 = vmatpush3.bf16.msra.mxu0 %v1340_v2  ;;  %s305_s19 = scalar_lea.vmem %s1590_s6, %s1887_s17  ;;  %s1167_s25 = sshll.u32 %s1644_s20, 3 }
  0x1f   : > { %1245 = vmatprep.subr.bf16.mxu0 %v1483_v0  ;;  %1240 = vmatpush3.bf16.msra.mxu1 %v1342_v25  ;;  %v306_v31 = vld [vmem:[%s305_s19] sm:$0xff]  ;;  %s404_s26 = scalar_lea.vmem %s1590_s6, %s1167_s25 }
  0x20   : > { %1253 = vmatprep.subr.bf16.mxu1 %v1483_v0  ;;  %v405_v55 = vld [vmem:[%s404_s26] sm:$0xff]  ;;  %s1669_s27 = scalar_select %p206_p11, 3, 4 }
  0x21   : > { %1234 = vmatmul.mubr.bf16.vlgmr.msra.gmra.mrb[0].mxu0 %v1485_v3  ;;  %s1694_s5 = scalar_select %p206_p11, 4, 3 }
  0x22   : > { %1249 = vmatprep.mubr.msk.bf16.mxu0 %vm1484_vm0, %v1483_v0  ;;  %1246 = vmatpush3.bf16.msra.mxu0 %v1343_v48  ;;  %s1884_s30 = sshll.u32 %s1669_s27, 3  ;;  %s1895_s20 = sshll.u32 %s1669_s27, 3 }
  0x23   : > { %1247 = vmatprep.subr.bf16.mxu0 %v1483_v0  ;;  %s503_s4 = scalar_lea.vmem %s1590_s6, %s1884_s30  ;;  %s1883_s8 = sshll.u32 %s1694_s5, 3 }
  0x24   : > { %s602_s19 = scalar_lea.vmem %s1590_s6, %s1883_s8 }
  0x25   : > { %s1719_s26 = scalar_select %p206_p11, 5, 2 }
  0x26   : > { %1248 = vmatpush3.bf16.msra.mxu0 %v1344_v49 }
  0x27   : > { %1261 = vmatprep.subr.bf16.mxu0 %v1483_v0 }
  0xf4   : > { %v265_v5 = vpop.f32.mrb[0].mxu0 }
  0xf5   : > { %v271_v6 = vadd.f32 %v265_v5, %v210_v4  ;;  %v1235_v7 = vpop.f32.mrb[1].mxu0 }
  0xf6   : > { %v268_v8 = vpop.f32.mrb[2].mxu0 }
  0xf7   : > { %v1161_v9 = vmul.f32 -1.442695, %v271_v6  ;;  %v1236_v10 = vpop.f32.mrb[3].mxu0 }
  0xf8   : > { %v1346_v10 = vld [vmem:[%s1573_s28 + $0x8] sm:$0xff]  }
  0xf9   : > { %1355 = vpow2.f32 %v1161_v9  ;;  %v1345_v9 = vld [vmem:[%s1573_s28] sm:$0xff]  }
  0xfa   : > { %1357 = vtanh.f32 %v271_v6 }
 0x103   : > { %v1356_v11 = vpop.eup %1355 }
 0x104   : > { %v276_v13 = vadd.f32 1.0, %v1356_v11  ;;  %v1358_v16 = vpop.eup %1357 }
 0x106   : > { %1359 = vrcp.f32 %v276_v13 }
 0x110   : > { %v1360_v17 = vpop.eup %1359 }
 0x111   : > { %v279_v18 = vsel %vm1596_vm3, %v1358_v16, %v1360_v17  ;;  %v504_v17 = vld [vmem:[%s503_s4] sm:$0xff]  ;;  %s1882_s4 = sshll.u32 %s1719_s26, 3 }
 0x112   : > { %282 = vrot.lane.b32.xlu0 %v279_v18, %s1486_s9  ;;  %v280_v21 = vmul.f32 0.0, %v279_v18 }
 0x184   : > { %v283_v19 = vpop.permute.xlu0 %282 }
 0x185   : > { %v285_v20 = vmul.f32 %v283_v19, %v279_v18 }
 0x187   : > { %287 = vrot.lane.b32.xlu0 %v285_v20, %s1487_s10 }
 0x1f9   : > { %v288_v22 = vpop.permute.xlu0 %287 }
 0x1fa   : > { %v290_v23 = vadd.f32 %v288_v22, %v280_v21 }
 0x1fc   : > { %1361 = vtanh.f32 %v290_v23 }
 0x206   : > { %v1362_v26 = vpop.eup %1361 }
 0x207   : > { %293 = vrot.lane.b32.xlu1 %v1362_v26, %s1486_s9 }
 0x279   : > { %v294_v27 = vpop.permute.xlu1 %293 }
 0x27a   : > { %v1609_v28 = vmul.f32 %v294_v27, %v279_v18 }
 0x27c   : > { %v307_v29 = vpack.c.bf16 %v1609_v28, %v1609_v28 }
 0x27e   : > { %313 = vrot.lane.b32.xlu1 %v307_v29, %s1487_s10 }
 0x2f0   : > { %v314_v30 = vpop.permute.xlu1 %313 }
 0x2f1   : > { %1242 = vmatmul.mubr.msk.bf16.vlgmr.msra.gmra.mrb[0].mxu1 %vm227_vm4, %v314_v30 }
 0x2f2   : > { %1257 = vmatprep.mubr.msk.bf16.mxu1 %vm1484_vm0, %v1483_v0  ;;  %1254 = vmatpush3.bf16.msra.mxu1 %v1345_v9 }
 0x2f3   : > { %1255 = vmatprep.subr.bf16.mxu1 %v1483_v0 }
 0x2f6   : > { %1256 = vmatpush3.bf16.msra.mxu1 %v1346_v10 }
 0x2f7   : > { %1269 = vmatprep.subr.bf16.mxu1 %v1483_v0 }
 0x3c4   : > { %v364_v32 = vpop.f32.mrb[0].mxu1 }
 0x3c5   : > { %v370_v33 = vadd.f32 %v364_v32, %v306_v31  ;;  %v1243_v34 = vpop.f32.mrb[1].mxu1 }
 0x3c6   : > { %v367_v35 = vpop.f32.mrb[2].mxu1 }
 0x3c7   : > { %v1166_v36 = vmul.f32 -1.442695, %v370_v33  ;;  %v1244_v37 = vpop.f32.mrb[3].mxu1  ;;  %v1347_v35 = vld [vmem:[%s1573_s28] sm:$0xff]  }
 0x3c9   : > { %1363 = vpow2.f32 %v1166_v36  ;;  %v1348_v36 = vld [vmem:[%s1573_s28 + $0x8] sm:$0xff]  }
 0x3ca   : > { %1365 = vtanh.f32 %v370_v33 }
 0x3d3   : > { %v1364_v38 = vpop.eup %1363 }
 0x3d4   : > { %v375_v39 = vadd.f32 1.0, %v1364_v38  ;;  %v1366_v40 = vpop.eup %1365 }
 0x3d6   : > { %1367 = vrcp.f32 %v375_v39 }
 0x3e0   : > { %v1368_v41 = vpop.eup %1367 }
 0x3e1   : > { %v378_v42 = vsel %vm1596_vm3, %v1366_v40, %v1368_v41 }
 0x3e2   : > { %381 = vrot.lane.b32.xlu0 %v378_v42, %s1486_s9  ;;  %v379_v45 = vmul.f32 %v378_v42, %v290_v23 }
 0x454   : > { %v382_v43 = vpop.permute.xlu0 %381 }
 0x455   : > { %v384_v44 = vmul.f32 %v382_v43, %v378_v42 }
 0x457   : > { %386 = vrot.lane.b32.xlu1 %v384_v44, %s1487_s10 }
 0x4c9   : > { %v387_v46 = vpop.permute.xlu1 %386 }
 0x4ca   : > { %v389_v47 = vadd.f32 %v387_v46, %v379_v45 }
 0x4cc   : > { %1369 = vtanh.f32 %v389_v47 }
 0x4d6   : > { %v1370_v50 = vpop.eup %1369 }
 0x4d7   : > { %392 = vrot.lane.b32.xlu0 %v1370_v50, %s1486_s9 }
 0x549   : > { %v393_v51 = vpop.permute.xlu0 %392 }
 0x54a   : > { %v1634_v52 = vmul.f32 %v393_v51, %v378_v42  ;;  %v603_v42 = vld [vmem:[%s602_s19] sm:$0xff]  ;;  %s701_s19 = scalar_lea.vmem %s1590_s6, %s1882_s4 }
 0x54c   : > { %v406_v53 = vpack.c.bf16 %v1634_v52, %v1634_v52 }
 0x54e   : > { %412 = vrot.lane.b32.xlu1 %v406_v53, %s1487_s10 }
 0x5c0   : > { %v413_v54 = vpop.permute.xlu1 %412 }
 0x5c1   : > { %1250 = vmatmul.mubr.msk.bf16.vlgmr.msra.gmra.mrb[4].mxu0 %vm227_vm4, %v413_v54 }
 0x5c2   : > { %1265 = vmatprep.mubr.msk.bf16.mxu0 %vm1484_vm0, %v1483_v0  ;;  %1262 = vmatpush3.bf16.msra.mxu0 %v1347_v35 }
 0x5c3   : > { %1263 = vmatprep.subr.bf16.mxu0 %v1483_v0 }
 0x5c6   : > { %1264 = vmatpush3.bf16.msra.mxu0 %v1348_v36 }
 0x5c7   : > { %1277 = vmatprep.subr.bf16.mxu0 %v1483_v0 }
 0x694   : > { %v463_v56 = vpop.f32.mrb[4].mxu0 }
 0x695   : > { %v469_v57 = vadd.f32 %v463_v56, %v405_v55  ;;  %v1251_v58 = vpop.f32.mrb[5].mxu0 }
 0x696   : > { %v466_v59 = vpop.f32.mrb[6].mxu0 }
 0x697   : > { %v1171_v60 = vmul.f32 -1.442695, %v469_v57  ;;  %v1252_v61 = vpop.f32.mrb[7].mxu0 }
 0x698   : > { %v1350_v61 = vld [vmem:[%s1573_s28 + $0x8] sm:$0xff]  }
 0x699   : > { %1371 = vpow2.f32 %v1171_v60  ;;  %v1349_v60 = vld [vmem:[%s1573_s28] sm:$0xff]  }
 0x69a   : > { %1373 = vtanh.f32 %v469_v57 }
 0x6a3   : > { %v1372_v62 = vpop.eup %1371 }
 0x6a4   : > { %v474_v63 = vadd.f32 1.0, %v1372_v62  ;;  %v1374_v1 = vpop.eup %1373 }
 0x6a6   : > { %1375 = vrcp.f32 %v474_v63 }
 0x6b0   : > { %v1376_v2 = vpop.eup %1375 }
 0x6b1   : > { %v477_v3 = vsel %vm1596_vm3, %v1374_v1, %v1376_v2 }
 0x6b2   : > { %480 = vrot.lane.b32.xlu0 %v477_v3, %s1486_s9  ;;  %v478_v6 = vmul.f32 %v477_v3, %v389_v47 }
 0x724   : > { %v481_v4 = vpop.permute.xlu0 %480 }
 0x725   : > { %v483_v5 = vmul.f32 %v481_v4, %v477_v3  ;;  %v702_v4 = vld [vmem:[%s701_s19] sm:$0xff]  ;;  %s1741_s19 = scalar_select %p206_p11, 6, 1 }
 0x727   : > { %485 = vrot.lane.b32.xlu1 %v483_v5, %s1487_s10  ;;  %s1886_s4 = sshll.u32 %s1741_s19, 3 }
 0x728   : > { %s800_s8 = scalar_lea.vmem %s1590_s6, %s1886_s4 }
 0x799   : > { %v486_v7 = vpop.permute.xlu1 %485 }
 0x79a   : > { %v488_v8 = vadd.f32 %v486_v7, %v478_v6 }
 0x79c   : > { %1377 = vtanh.f32 %v488_v8 }
 0x7a6   : > { %v1378_v11 = vpop.eup %1377 }
 0x7a7   : > { %491 = vrot.lane.b32.xlu0 %v1378_v11, %s1486_s9 }
 0x819   : > { %v492_v12 = vpop.permute.xlu0 %491 }
 0x81a   : > { %v1659_v13 = vmul.f32 %v492_v12, %v477_v3 }
 0x81c   : > { %v505_v14 = vpack.c.bf16 %v1659_v13, %v1659_v13 }
 0x81e   : > { %511 = vrot.lane.b32.xlu1 %v505_v14, %s1487_s10 }
 0x890   : > { %v512_v16 = vpop.permute.xlu1 %511 }
 0x891   : > { %1258 = vmatmul.mubr.msk.bf16.vlgmr.msra.gmra.mrb[4].mxu1 %vm227_vm4, %v512_v16 }
 0x892   : > { %1273 = vmatprep.mubr.msk.bf16.mxu1 %vm1484_vm0, %v1483_v0  ;;  %1270 = vmatpush3.bf16.msra.mxu1 %v1349_v60 }
 0x893   : > { %1271 = vmatprep.subr.bf16.mxu1 %v1483_v0 }
 0x896   : > { %1272 = vmatpush3.bf16.msra.mxu1 %v1350_v61 }
 0x897   : > { %1285 = vmatprep.subr.bf16.mxu1 %v1483_v0 }
 0x964   : > { %v562_v18 = vpop.f32.mrb[4].mxu1 }
 0x965   : > { %v568_v19 = vadd.f32 %v562_v18, %v504_v17  ;;  %v1259_v20 = vpop.f32.mrb[5].mxu1 }
 0x966   : > { %v565_v21 = vpop.f32.mrb[6].mxu1 }
 0x967   : > { %v1176_v22 = vmul.f32 -1.442695, %v568_v19  ;;  %v1260_v23 = vpop.f32.mrb[7].mxu1 }
 0x968   : > { %v1351_v23 = vld [vmem:[%s1573_s28] sm:$0xff]  }
 0x969   : > { %1379 = vpow2.f32 %v1176_v22 }
 0x96a   : > { %1381 = vtanh.f32 %v568_v19 }
 0x973   : > { %v1380_v24 = vpop.eup %1379 }
 0x974   : > { %v573_v25 = vadd.f32 1.0, %v1380_v24  ;;  %v1382_v26 = vpop.eup %1381  ;;  %v1352_v24 = vld [vmem:[%s1573_s28 + $0x8] sm:$0xff]  }
 0x976   : > { %1383 = vrcp.f32 %v573_v25 }
 0x980   : > { %v1384_v27 = vpop.eup %1383 }
 0x981   : > { %v576_v29 = vsel %vm1596_vm3, %v1382_v26, %v1384_v27 }
 0x982   : > { %579 = vrot.lane.b32.xlu0 %v576_v29, %s1486_s9  ;;  %v577_v32 = vmul.f32 %v576_v29, %v488_v8 }
 0x9f4   : > { %v580_v30 = vpop.permute.xlu0 %579 }
 0x9f5   : > { %v582_v31 = vmul.f32 %v580_v30, %v576_v29 }
 0x9f7   : > { %584 = vrot.lane.b32.xlu1 %v582_v31, %s1487_s10  ;;  %v801_v31 = vld [vmem:[%s800_s8] sm:$0xff]  ;;  %s1759_s8 = scalar_select %p206_p11, 7, 0 }
 0xa69   : > { %v585_v33 = vpop.permute.xlu1 %584 }
 0xa6a   : > { %v587_v34 = vadd.f32 %v585_v33, %v577_v32 }
 0xa6c   : > { %1385 = vtanh.f32 %v587_v34 }
 0xa76   : > { %v1386_v37 = vpop.eup %1385 }
 0xa77   : > { %590 = vrot.lane.b32.xlu0 %v1386_v37, %s1486_s9 }
 0xae9   : > { %v591_v38 = vpop.permute.xlu0 %590 }
 0xaea   : > { %v1684_v39 = vmul.f32 %v591_v38, %v576_v29 }
 0xaec   : > { %v604_v40 = vpack.c.bf16 %v1684_v39, %v1684_v39 }
 0xaee   : > { %610 = vrot.lane.b32.xlu1 %v604_v40, %s1487_s10 }
 0xb60   : > { %v611_v41 = vpop.permute.xlu1 %610 }
 0xb61   : > { %1266 = vmatmul.mubr.msk.bf16.vlgmr.msra.gmra.mrb[8].mxu0 %vm227_vm4, %v611_v41 }
 0xb62   : > { %1281 = vmatprep.mubr.msk.bf16.mxu0 %vm1484_vm0, %v1483_v0  ;;  %1278 = vmatpush3.bf16.msra.mxu0 %v1351_v23 }
 0xb63   : > { %1279 = vmatprep.subr.bf16.mxu0 %v1483_v0 }
 0xb66   : > { %1280 = vmatpush3.bf16.msra.mxu0 %v1352_v24 }
 0xc34   : > { %v661_v43 = vpop.f32.mrb[8].mxu0 }
 0xc35   : > { %v667_v44 = vadd.f32 %v661_v43, %v603_v42  ;;  %v1267_v45 = vpop.f32.mrb[9].mxu0 }
 0xc36   : > { %v664_v46 = vpop.f32.mrb[10].mxu0 }
 0xc37   : > { %v1181_v47 = vmul.f32 -1.442695, %v667_v44  ;;  %v1268_v48 = vpop.f32.mrb[11].mxu0 }
 0xc39   : > { %1387 = vpow2.f32 %v1181_v47 }
 0xc3a   : > { %1389 = vtanh.f32 %v667_v44 }
 0xc43   : > { %v1388_v49 = vpop.eup %1387 }
 0xc44   : > { %v672_v50 = vadd.f32 1.0, %v1388_v49  ;;  %v1390_v51 = vpop.eup %1389  ;;  %v1353_v49 = vld [vmem:[%s1573_s28] sm:$0xff]  }
 0xc46   : > { %1391 = vrcp.f32 %v672_v50  ;;  %v1354_v50 = vld [vmem:[%s1573_s28 + $0x8] sm:$0xff]   ;;  %s1885_s28 = sshll.u32 %s1759_s8, 3 }
 0xc47   : > { %s899_s30 = scalar_lea.vmem %s1590_s6, %s1885_s28  ;;  %s1888_s6 = sand.u32 1, %s1473_s13  }
 0xc50   : > { %v1392_v53 = vpop.eup %1391 }
 0xc51   : > { %v675_v54 = vsel %vm1596_vm3, %v1390_v51, %v1392_v53 }
 0xc52   : > { %678 = vrot.lane.b32.xlu0 %v675_v54, %s1486_s9  ;;  %v676_v57 = vmul.f32 %v675_v54, %v587_v34 }
 0xcc4   : > { %v679_v55 = vpop.permute.xlu0 %678 }
 0xcc5   : > { %v681_v56 = vmul.f32 %v679_v55, %v675_v54 }
 0xcc7   : > { %683 = vrot.lane.b32.xlu1 %v681_v56, %s1487_s10 }
 0xd39   : > { %v684_v58 = vpop.permute.xlu1 %683 }
 0xd3a   : > { %v686_v59 = vadd.f32 %v684_v58, %v676_v57 }
 0xd3c   : > { %1393 = vtanh.f32 %v686_v59 }
 0xd46   : > { %v1394_v62 = vpop.eup %1393 }
 0xd47   : > { %689 = vrot.lane.b32.xlu0 %v1394_v62, %s1486_s9 }
 0xdb9   : > { %v690_v63 = vpop.permute.xlu0 %689 }
 0xdba   : > { %v1709_v1 = vmul.f32 %v690_v63, %v675_v54 }
 0xdbc   : > { %v703_v2 = vpack.c.bf16 %v1709_v1, %v1709_v1 }
 0xdbe   : > { %709 = vrot.lane.b32.xlu1 %v703_v2, %s1487_s10 }
 0xe30   : > { %v710_v3 = vpop.permute.xlu1 %709 }
 0xe31   : > { %1274 = vmatmul.mubr.msk.bf16.vlgmr.msra.gmra.mrb[8].mxu1 %vm227_vm4, %v710_v3 }
 0xe32   : > { %1289 = vmatprep.mubr.msk.bf16.mxu1 %vm1484_vm0, %v1483_v0  ;;  %1286 = vmatpush3.bf16.msra.mxu1 %v1353_v49 }
 0xe33   : > { %1287 = vmatprep.subr.bf16.mxu1 %v1483_v0  ;;  %v900_v0 = vld [vmem:[%s899_s30] sm:$0xff]  ;;  %s1152_s30 = sshll.u32 %s1888_s6, 6 }
 0xe34   : > { %s1779_s28 = scalar_lea.vmem [#allocation2], %s1152_s30 }
 0xe35   : > { %s301_s4 = scalar_lea.vmem %s1779_s28, %s1158_s7 [#allocation2]  ;;  %s499_s17 = scalar_lea.vmem %s1779_s28, %s1167_s25 [#allocation2] }
 0xe36   : > { %1288 = vmatpush3.bf16.msra.mxu1 %v1354_v50  ;;  %s400_s7 = scalar_lea.vmem %s1779_s28, %s1893_s29 [#allocation2]  ;;  %s598_s25 = scalar_lea.vmem %s1779_s28, %s1895_s20 [#allocation2] }
 0xe37   : > { %s1204_s29 = sshll.u32 %s1532_s16, 10  ;;  %s1015_s27 = sshll.u32 %s1779_s28, 4  ;;  %s1831_s27 = int_to_ptr.vmem [resolvable:$true] %s1015_s27 }
 0xe38   : > { %s1899_s16 = sand.u32 1, %s1473_s13  }
 0xf04   : > { %v760_v5 = vpop.f32.mrb[8].mxu1 }
 0xf05   : > { %v766_v6 = vadd.f32 %v760_v5, %v702_v4  ;;  %v1275_v7 = vpop.f32.mrb[9].mxu1 }
 0xf06   : > { %v763_v8 = vpop.f32.mrb[10].mxu1 }
 0xf07   : > { %v1186_v9 = vmul.f32 -1.442695, %v766_v6  ;;  %v1276_v10 = vpop.f32.mrb[11].mxu1 }
 0xf09   : > { %1395 = vpow2.f32 %v1186_v9 }
 0xf0a   : > { %1397 = vtanh.f32 %v766_v6 }
 0xf13   : > { %v1396_v11 = vpop.eup %1395 }
 0xf14   : > { %v771_v12 = vadd.f32 1.0, %v1396_v11  ;;  %v1398_v14 = vpop.eup %1397 }
 0xf16   : > { %1399 = vrcp.f32 %v771_v12 }
 0xf20   : > { %v1400_v16 = vpop.eup %1399 }
 0xf21   : > { %v774_v17 = vsel %vm1596_vm3, %v1398_v14, %v1400_v16 }
 0xf22   : > { %777 = vrot.lane.b32.xlu0 %v774_v17, %s1486_s9  ;;  %v775_v20 = vmul.f32 %v774_v17, %v686_v59 }
 0xf94   : > { %v778_v18 = vpop.permute.xlu0 %777 }
 0xf95   : > { %v780_v19 = vmul.f32 %v778_v18, %v774_v17 }
 0xf97   : > { %782 = vrot.lane.b32.xlu1 %v780_v19, %s1487_s10 }
0x1009   : > { %v783_v21 = vpop.permute.xlu1 %782 }
0x100a   : > { %v785_v22 = vadd.f32 %v783_v21, %v775_v20 }
0x100c   : > { %1401 = vtanh.f32 %v785_v22 }
0x1016   : > { %v1402_v25 = vpop.eup %1401 }
0x1017   : > { %788 = vrot.lane.b32.xlu0 %v1402_v25, %s1486_s9 }
0x1089   : > { %v789_v26 = vpop.permute.xlu0 %788 }
0x108a   : > { %v1733_v27 = vmul.f32 %v789_v26, %v774_v17 }
0x108c   : > { %v802_v29 = vpack.c.bf16 %v1733_v27, %v1733_v27 }
0x108e   : > { %808 = vrot.lane.b32.xlu1 %v802_v29, %s1487_s10 }
0x1100   : > { %v809_v30 = vpop.permute.xlu1 %808 }
0x1101   : > { %1282 = vmatmul.mubr.msk.bf16.vlgmr.msra.gmra.mrb[12].mxu0 %vm227_vm4, %v809_v30 }
0x11d4   : > { %v859_v32 = vpop.f32.mrb[12].mxu0 }
0x11d5   : > { %v865_v33 = vadd.f32 %v859_v32, %v801_v31  ;;  %v1283_v34 = vpop.f32.mrb[13].mxu0 }
0x11d6   : > { %v862_v35 = vpop.f32.mrb[14].mxu0 }
0x11d7   : > { %v1191_v36 = vmul.f32 -1.442695, %v865_v33  ;;  %v1284_v37 = vpop.f32.mrb[15].mxu0 }
0x11d9   : > { %1403 = vpow2.f32 %v1191_v36 }
0x11da   : > { %1405 = vtanh.f32 %v865_v33 }
0x11e3   : > { %v1404_v38 = vpop.eup %1403 }
0x11e4   : > { %v870_v40 = vadd.f32 1.0, %v1404_v38  ;;  %v1406_v41 = vpop.eup %1405 }
0x11e6   : > { %1407 = vrcp.f32 %v870_v40 }
0x11f0   : > { %v1408_v42 = vpop.eup %1407 }
0x11f1   : > { %v873_v43 = vsel %vm1596_vm3, %v1406_v41, %v1408_v42 }
0x11f2   : > { %876 = vrot.lane.b32.xlu0 %v873_v43, %s1486_s9  ;;  %v874_v46 = vmul.f32 %v873_v43, %v785_v22 }
0x1264   : > { %v877_v44 = vpop.permute.xlu0 %876 }
0x1265   : > { %v879_v45 = vmul.f32 %v877_v44, %v873_v43 }
0x1267   : > { %881 = vrot.lane.b32.xlu1 %v879_v45, %s1487_s10 }
0x12d9   : > { %v882_v47 = vpop.permute.xlu1 %881 }
0x12da   : > { %v884_v48 = vadd.f32 %v882_v47, %v874_v46 }
0x12dc   : > { %1409 = vtanh.f32 %v884_v48 }
0x12e6   : > { %v1410_v51 = vpop.eup %1409 }
0x12e7   : > { %887 = vrot.lane.b32.xlu0 %v1410_v51, %s1486_s9 }
0x1359   : > { %v888_v53 = vpop.permute.xlu0 %887 }
0x135a   : > { %v890_v54 = vmul.f32 %v888_v53, %v873_v43 }
0x135c   : > { %v901_v55 = vpack.c.bf16 %v890_v54, %v890_v54 }
0x135e   : > { %907 = vrot.lane.b32.xlu1 %v901_v55, %s1487_s10 }
0x13d0   : > { %v908_v56 = vpop.permute.xlu1 %907 }
0x13d1   : > { %1290 = vmatmul.mubr.msk.bf16.vlgmr.msra.gmra.mrb[12].mxu1 %vm227_vm4, %v908_v56 }
0x14a4   : > { %v958_v57 = vpop.f32.mrb[12].mxu1 }
0x14a5   : > { %v964_v58 = vadd.f32 %v958_v57, %v900_v0  ;;  %v1291_v59 = vpop.f32.mrb[13].mxu1 }
0x14a6   : > { %v961_v60 = vpop.f32.mrb[14].mxu1 }
0x14a7   : > { %v1196_v61 = vmul.f32 -1.442695, %v964_v58  ;;  %v1292_v62 = vpop.f32.mrb[15].mxu1 }
0x14a9   : > { %1411 = vpow2.f32 %v1196_v61 }
0x14aa   : > { %1413 = vtanh.f32 %v964_v58 }
0x14b3   : > { %v1412_v63 = vpop.eup %1411 }
0x14b4   : > { %v969_v2 = vadd.f32 1.0, %v1412_v63  ;;  %v1414_v3 = vpop.eup %1413 }
0x14b6   : > { %1415 = vrcp.f32 %v969_v2 }
0x14c0   : > { %v1416_v4 = vpop.eup %1415 }
0x14c1   : > { %v972_v5 = vsel %vm1596_vm3, %v1414_v3, %v1416_v4 }
0x14c2   : > { %975 = vrot.lane.b32.xlu0 %v972_v5, %s1486_s9  ;;  %v973_v15 = vmul.f32 %v972_v5, %v884_v48 }
0x1534   : > { %v976_v6 = vpop.permute.xlu0 %975 }
0x1535   : > { %v978_v7 = vmul.f32 %v976_v6, %v972_v5 }
0x1537   : > { %980 = vrot.lane.b32.xlu1 %v978_v7, %s1487_s10 }
0x153b   : > { %298 = vrot.lane.b32.xlu1 %v1609_v28, %s1487_s10 }
0x153f   : > { %496 = vrot.lane.b32.xlu1 %v1659_v13, %s1487_s10 }
0x1543   : > { %694 = vrot.lane.b32.xlu1 %v1709_v1, %s1487_s10 }
0x1547   : > { %892 = vrot.lane.b32.xlu1 %v890_v54, %s1487_s10 }
0x15a9   : > { %v981_v8 = vpop.permute.xlu1 %980 }
0x15aa   : > { %v983_v9 = vadd.f32 %v981_v8, %v973_v15 }
0x15ac   : > { %1417 = vtanh.f32 %v983_v9 }
0x15ad   : > { %v299_v28 = vpop.permute.xlu1 %298 }
0x15ae   : > { %302 = vst.msk [vmem:[%s301_s4] sm:$0xff] %vm227_vm4, %v299_v28  ;;  %s1896_s4 = sshll.u32 %s1694_s5, 3 }
0x15af   : > { %s697_s11 = scalar_lea.vmem %s1779_s28, %s1896_s4 [#allocation2] }
0x15b1   : > { %v497_v13 = vpop.permute.xlu1 %496 }
0x15b2   : > { %500 = vst.msk [vmem:[%s499_s17] sm:$0xff] %vm227_vm4, %v497_v13  ;;  %s1894_s17 = sshll.u32 %s1741_s19, 3  ;;  %s1897_s19 = sshll.u32 %s1719_s26, 3 }
0x15b3   : > { %s796_s30 = scalar_lea.vmem %s1779_s28, %s1897_s19 [#allocation2]  ;;  %s1829_s26 = scalar_lea.hbm %s1880_s2, %s1204_s29 }
0x15b5   : > { %v695_v10 = vpop.permute.xlu1 %694 }
0x15b6   : > { %v1418_v1 = vpop.eup %1417 }
0x15b7   : > { %986 = vrot.lane.b32.xlu0 %v1418_v1, %s1486_s9  ;;  %s895_s9 = scalar_lea.vmem %s1779_s28, %s1894_s17 [#allocation2] }
0x15bb   : > { %397 = vrot.lane.b32.xlu0 %v1634_v52, %s1487_s10 }
0x15bf   : > { %595 = vrot.lane.b32.xlu0 %v1684_v39, %s1487_s10  ;;  %v893_v39 = vpop.permute.xlu1 %892 }
0x15c3   : > { %793 = vrot.lane.b32.xlu0 %v1733_v27, %s1487_s10 }
0x1629   : > { %v987_v11 = vpop.permute.xlu0 %986 }
0x162a   : > { %v989_v12 = vmul.f32 %v987_v11, %v972_v5 }
0x162c   : > { %991 = vrot.lane.b32.xlu0 %v989_v12, %s1487_s10  ;;  %s1157_s10 = sshll.u32 %s1564_s24, 3  ;;  %s1837_s24 = scalar_lea.sflag [#allocation3], %s1899_s16 }
0x162d   : > { %v398_v52 = vpop.permute.xlu0 %397  ;;  %s199_s20 = scalar_lea.vmem %s1881_s3, %s1157_s10 }
0x162e   : > { %401 = vst.msk [vmem:[%s400_s7] sm:$0xff] %vm227_vm4, %v398_v52  ;;  %s1898_s7 = sshll.u32 %s1759_s8, 3  ;;  %s1419_s8 = scalar_lea.vmem %s1831_s27, 1024 }
0x162f   : > { %896 = vst.msk [vmem:[%s895_s9] sm:$0xff] %vm227_vm4, %v893_v39  ;;  %s994_s17 = scalar_lea.vmem %s1779_s28, %s1898_s7 [#allocation2]  ;;  %p1420_p12 = scmp.ne.s32.totalorder %s1831_s27, %s1419_s8 }
0x1630   : > { %s1488_s28 = smov [#allocation2]  }
0x1631   : > { %v596_v14 = vpop.permute.xlu0 %595  ;;  %p1421_p13 = pnand %p1420_p12, %p1549_p5  ;;  %s1423_s6 = sshll.u32 %s1488_s28, 4  ;;  %s1424_s6 = int_to_ptr.vmem [resolvable:$false] %s1423_s6 }
0x1632   : > { %599 = vst.msk [vmem:[%s598_s25] sm:$0xff] %vm227_vm4, %v596_v14  ;;  %s1425_s25 = scalar_lea.vmem %s1424_s6, 2048  ;;  %p1426_p1 = scmp.lt.s32.totalorder %s1831_s27, %s1424_s6 }
0x1633   : > { %698 = vst.msk [vmem:[%s697_s11] sm:$0xff] %vm227_vm4, %v695_v10  ;;  %p1422_p0 = pneg %p1421_p13  ;;  %p1427_p2 = scmp.lt.s32.totalorder %s1425_s25, %s1419_s8 }
0x1635   : > { %v794_v16 = vpop.permute.xlu0 %793  ;;  %p1428_p3 = por %p1427_p2, %p1426_p1 }
0x1636   : > { %797 = vst.msk [vmem:[%s796_s30] sm:$0xff] %vm227_vm4, %v794_v16 }
0x1637   : > { %p1429_p4 = pnand %p1428_p3, %p1422_p0 }
0x169e   : > { %v992_v17 = vpop.permute.xlu0 %991 }
0x169f   : > { %995 = vst.msk [vmem:[%s994_s17] sm:$0xff] %vm227_vm4, %v992_v17  ;;  %996 = vst.msk [vmem:[%s199_s20] sm:$0xff] %vm227_vm4, %v992_v17 }
0x16a0   : > { %1432 = shalt.err (!%p1429_p4)
}
0x16a1   : > { %s1433_s11 = scalar_lea.hbm %s1829_s26, 1024  ;;  %s1437_s10 = scalar_lea.hbm %s1880_s2, 2048 }
0x16a2   : > { %p1434_p7 = scmp.ne.s32.totalorder %s1829_s26, %s1433_s11  ;;  %p1438_p10 = scmp.lt.u32.totalorder %s1829_s26, %s1880_s2 }
0x16a3   : > { %p1439_p11 = scmp.lt.u32.totalorder %s1437_s10, %s1433_s11  ;;  %p1441_p13 = scmp.lt.u32.totalorder %s1433_s11, %s1829_s26 }
0x16a4   : > { %p1435_p8 = pnand %p1434_p7, %p1549_p5 }
0x16a5   : > { %p1440_p12 = por %p1439_p11, %p1438_p10 }
0x16a6   : > { %p1436_p9 = pneg %p1435_p8 }
0x16a7   : > { %p1442_p0 = por %p1441_p13, %p1440_p12 }
0x16a9   : > { %p1443_p1 = pnand %p1442_p0, %p1436_p9 }
0x16ab   : > { %1446 = shalt.err (!%p1443_p1)
}
0x16ac   : > { %s1489_s17 = smov 128   ;;  %s1490_s9 = smov 8  }
0x16ad   : > { %1293 = dma.vmem_to_hbm [thread:$0]  (%p1549_p5), %s1831_s27, 1024, %s1829_s26, %s1837_s24, %s1489_s17, %s1489_s17, %s1490_s9  }
0x16ae PF: > { %p1299_p2 = scmp.ge.s32.totalorder %s1481_s15, 2  ;;  %s1033_s5 = sand.u32 1, %s1469_s12  }
0x16af   : > { %s1034_s20 = scalar_lea.sflag [#allocation3], %s1033_s5 }
0x16b0   : > { %p1296_p3 = pnand %p1299_p2, %p1553_p6 }
0x16b2   : > { %1464 = dma.done.wait (!%p1296_p3), %s1034_s20, 1024  }
0x16b3   : > { %1466 = vsyncadd (!%p1296_p3), %s1034_s20, 4294966272  ;;  %p14_p4 = scmp.ge.s32.totalorder %s1536_s18, 4   ;;  %s1900_s12 = smov %s1473_s13 }
0x16b4   : > { %s1901_s13 = smov %s1477_s14  ;;  %s1902_s14 = smov %s1547_s21 }
0x16b5   : > { %s1903_s15 = smov %s1536_s18  ;;  %16 = sbr.rel (!%p14_p4) target bundleno = 3 (0x3), region = 94 }
0x16bc   :  { %1046 = vsyncpa [#allocation3], 1 }
0x16bd   :  { %1048 = vsyncpa [#allocation3 + $0x1], 1 }

// kernel: rnn_forward.2
= control target key start
LH: loop header
LB: loop body
LE: loop exit
PB: predicated region body
PF: predicated region fallthrough
CT: control target
= control target key end

     0   :  { %9 = vsyncpa [#allocation3], 0  ;;  %s1870_s0 = inlined_call_operand.vmem [shape: f32[2,8,8,128], index: 0, kind: input, shape index: {}]   ;;  %s1871_s1 = inlined_call_operand.vmem [shape: bf16[2,32,128], index: 1, kind: input, shape index: {}]   ;;  %s1872_s2 = inlined_call_operand.vmem [shape: f32[2,8,8,32], index: 2, kind: output, shape index: {0}]   ;;  %s1873_s3 = inlined_call_operand.hbm [shape: f32[2,8,32], index: 3, kind: output, shape index: {1}]  }
   0x1   :  { %11 = vsyncpa [#allocation3 + $0x1], 0  ;;  %s1508_s12 = smov 0   ;;  %s1510_s13 = smov 0  }
   0x2   :  { %s1512_s14 = smov 0   ;;  %s1514_s15 = smov 0  }
   0x3 LB: > { %s1529_s16 = sadd.s32 4294967295, %s1480_s15   ;;  %s1149_s17 = sadd.s32 4294967294, %s1480_s15   ;;  %s1480_s15 = sphi %s1514_s15, %s1893_s15   ;;  %s1476_s14 = sphi %s1512_s14, %s1892_s14   ;;  %s1472_s13 = sphi %s1510_s13, %s1891_s13   ;;  %s1468_s12 = sphi %s1508_s12, %s1890_s12  }
   0x4   : > { %s1533_s18 = sadd.s32 1, %s1480_s15   ;;  %s102_s19 = sadd.s32 1, %s1476_s14 }
   0x5   : > { %s99_s20 = ssub.s32 %s1480_s15, %s1533_s18  ;;  %p112_p0 = scmp.ne.s32.totalorder %s1476_s14, %s1472_s13 }
   0x6   : > { %p100_p1 = scmp.eq.s32.totalorder %s99_s20, 0  ;;  %p113_p2 = scmp.eq.s32.totalorder %s1529_s16, 1 }
   0x7   : > { %p118_p3 = scmp.ne.s32.totalorder %s1472_s13, %s1468_s12  ;;  %p119_p4 = scmp.eq.s32.totalorder %s1149_s17, 1 }
   0x8   : > { %s1544_s21 = scalar_select %p100_p1, %s1476_s14, %s102_s19  }
   0x9   : > { %p1546_p5 = por %p113_p2, %p112_p0  ;;  %p1550_p6 = por %p119_p4, %p118_p3 }
   0xa   : > { %p1152_p7 = scmp.ge.s32.totalorder %s1480_s15, 1  ;;  %p153_p8 = scmp.lt.s32.totalorder %s1480_s15, 3 }
   0xc   : > { %p154_p9 = pnand %p1152_p7, %p153_p8 }
   0xd   : > { %p187_p10 = scmp.lt.s32.totalorder (!%p154_p9), %s1529_s16, 1  ;;  %v1482_v0 = vmov (!%p154_p9), 0.0   ;;  %vm1483_vm0 = vmmov (!%p154_p9), 0   ;;  %v1484_v3 = vmov (!%p154_p9), 0   ;;  %p208_p11 = scmp.eq.s32.totalorder (!%p154_p9), %s1529_s16, 0  ;;  %v203_v12 = vlaneseq (!%p154_p9) }
   0xe   : > { %157 = sbr.rel (%p154_p9) target bundleno = 5805 (0x16ad), region = 28  ;;  %1230 = vmatprep.subr.bf16.mxu0 (!%p154_p9), %v1482_v0  ;;  %1234 = vmatprep.mubr.msk.bf16.mxu0 (!%p154_p9), %vm1483_vm0, %v1482_v0  ;;  %s1485_s9 = smov (!%p154_p9), 64   ;;  %vm229_vm4 = vcmask (!%p154_p9), 261120  }
   0xf   : > { %1238 = vmatprep.subr.bf16.mxu1 (!%p154_p9), %v1482_v0  ;;  %1242 = vmatprep.mubr.msk.bf16.mxu1 (!%p154_p9), %vm1483_vm0, %v1482_v0  ;;  %v204_v14 = vand.u32 (!%p154_p9), 127, %v203_v12  ;;  %s1486_s10 = smov (!%p154_p9), 32  }
  0x11   : > { %vm205_vm1 = vcmp.ge.s32.totalorder (!%p154_p9), %v204_v14, 64  ;;  %vm206_vm2 = vcmp.lt.s32.totalorder (!%p154_p9), %v204_v14, 96 }
  0x12   : > { %vm1595_vm3 = vmand (!%p154_p9), %vm205_vm1, %vm206_vm2 }
  0x15   : > { %s1561_s24 = scalar_select %p187_p10, %s1529_s16, 1 }
  0x16   : > { %s1581_s29 = scalar_select %p208_p11, 0, 7 }
  0x17   : > { %s1204_s25 = sshll.u32 %s1561_s24, 4  ;;  %s1203_s30 = sshll.u32 %s1561_s24, 6 }
  0x18   : > { %s1570_s28 = scalar_lea.vmem %s1871_s1, %s1204_s25  ;;  %s1589_s6 = scalar_lea.vmem %s1870_s0, %s1203_s30 }
  0x19   : > { %v1338_v1 = vld [vmem:[%s1570_s28] sm:$0xff]   ;;  %v1339_v2 = vld [vmem:[%s1570_s28 + $0x8] sm:$0xff]   ;;  %s1160_s7 = sshll.u32 %s1581_s29, 3 }
  0x1a   : > { %1231 = vmatpush3.bf16.msra.mxu0 %v1338_v1  ;;  %s211_s8 = scalar_lea.vmem %s1589_s6, %s1160_s7  ;;  %v1340_v24 = vld [vmem:[%s1570_s28] sm:$0xff]   ;;  %v1341_v25 = vld [vmem:[%s1570_s28 + $0x8] sm:$0xff]  }
  0x1b   : > { %1232 = vmatprep.subr.bf16.mxu0 %v1482_v0  ;;  %v212_v4 = vld [vmem:[%s211_s8] sm:$0xff]  ;;  %1239 = vmatpush3.bf16.msra.mxu1 %v1340_v24  ;;  %s1618_s11 = scalar_select %p208_p11, 1, 6  ;;  %v1343_v49 = vld [vmem:[%s1570_s28 + $0x8] sm:$0xff]  }
  0x1c   : > { %1240 = vmatprep.subr.bf16.mxu1 %v1482_v0  ;;  %v1342_v48 = vld [vmem:[%s1570_s28] sm:$0xff]   ;;  %s1643_s20 = scalar_select %p208_p11, 2, 5 }
  0x1d   : > { %s1164_s17 = sshll.u32 %s1618_s11, 3 }
  0x1e   : > { %1233 = vmatpush3.bf16.msra.mxu0 %v1339_v2  ;;  %s307_s19 = scalar_lea.vmem %s1589_s6, %s1164_s17  ;;  %s1879_s25 = sshll.u32 %s1643_s20, 3 }
  0x1f   : > { %1246 = vmatprep.subr.bf16.mxu0 %v1482_v0  ;;  %1241 = vmatpush3.bf16.msra.mxu1 %v1341_v25  ;;  %v308_v31 = vld [vmem:[%s307_s19] sm:$0xff]  ;;  %s406_s26 = scalar_lea.vmem %s1589_s6, %s1879_s25  ;;  %s1884_s29 = sshll.u32 %s1643_s20, 3 }
  0x20   : > { %1254 = vmatprep.subr.bf16.mxu1 %v1482_v0  ;;  %v407_v55 = vld [vmem:[%s406_s26] sm:$0xff]  ;;  %s1668_s27 = scalar_select %p208_p11, 3, 4 }
  0x21   : > { %1235 = vmatmul.mubr.bf16.vlgmr.msra.gmra.mrb[0].mxu0 %v1484_v3  ;;  %s1693_s8 = scalar_select %p208_p11, 4, 3 }
  0x22   : > { %1250 = vmatprep.mubr.msk.bf16.mxu0 %vm1483_vm0, %v1482_v0  ;;  %1247 = vmatpush3.bf16.msra.mxu0 %v1342_v48  ;;  %s1876_s4 = sshll.u32 %s1668_s27, 3 }
  0x23   : > { %1248 = vmatprep.subr.bf16.mxu0 %v1482_v0  ;;  %s505_s5 = scalar_lea.vmem %s1589_s6, %s1876_s4  ;;  %s1874_s19 = sshll.u32 %s1693_s8, 3 }
  0x24   : > { %s604_s26 = scalar_lea.vmem %s1589_s6, %s1874_s19 }
  0x26   : > { %1249 = vmatpush3.bf16.msra.mxu0 %v1343_v49 }
  0x27   : > { %1262 = vmatprep.subr.bf16.mxu0 %v1482_v0 }
  0xf4   : > { %v267_v5 = vpop.f32.mrb[0].mxu0 }
  0xf5   : > { %v273_v6 = vadd.f32 %v267_v5, %v212_v4  ;;  %v1236_v7 = vpop.f32.mrb[1].mxu0 }
  0xf6   : > { %v270_v8 = vpop.f32.mrb[2].mxu0 }
  0xf7   : > { %v1163_v9 = vmul.f32 -1.442695, %v273_v6  ;;  %v1237_v10 = vpop.f32.mrb[3].mxu0 }
  0xf8   : > { %v1345_v10 = vld [vmem:[%s1570_s28 + $0x8] sm:$0xff]  }
  0xf9   : > { %1354 = vpow2.f32 %v1163_v9  ;;  %v1344_v9 = vld [vmem:[%s1570_s28] sm:$0xff]  }
  0xfa   : > { %1356 = vtanh.f32 %v273_v6 }
 0x103   : > { %v1355_v11 = vpop.eup %1354 }
 0x104   : > { %v278_v13 = vadd.f32 1.0, %v1355_v11  ;;  %v1357_v16 = vpop.eup %1356 }
 0x106   : > { %1358 = vrcp.f32 %v278_v13 }
 0x110   : > { %v1359_v17 = vpop.eup %1358 }
 0x111   : > { %v281_v18 = vsel %vm1595_vm3, %v1357_v16, %v1359_v17  ;;  %v506_v17 = vld [vmem:[%s505_s5] sm:$0xff]  ;;  %s1718_s5 = scalar_select %p208_p11, 5, 2 }
 0x112   : > { %284 = vrot.lane.b32.xlu0 %v281_v18, %s1485_s9  ;;  %v282_v21 = vmul.f32 0.0, %v281_v18 }
 0x113   : > { %s1887_s11 = sshll.u32 %s1718_s5, 3 }
 0x184   : > { %v285_v19 = vpop.permute.xlu0 %284 }
 0x185   : > { %v287_v20 = vmul.f32 %v285_v19, %v281_v18 }
 0x187   : > { %289 = vrot.lane.b32.xlu0 %v287_v20, %s1486_s10 }
 0x1f9   : > { %v290_v22 = vpop.permute.xlu0 %289 }
 0x1fa   : > { %v292_v23 = vadd.f32 %v290_v22, %v282_v21 }
 0x1fc   : > { %1360 = vtanh.f32 %v292_v23 }
 0x206   : > { %v1361_v26 = vpop.eup %1360 }
 0x207   : > { %295 = vrot.lane.b32.xlu1 %v1361_v26, %s1485_s9 }
 0x279   : > { %v296_v27 = vpop.permute.xlu1 %295 }
 0x27a   : > { %v1608_v28 = vmul.f32 %v296_v27, %v281_v18 }
 0x27c   : > { %v309_v29 = vpack.c.bf16 %v1608_v28, %v1608_v28 }
 0x27e   : > { %315 = vrot.lane.b32.xlu1 %v309_v29, %s1486_s10 }
 0x2f0   : > { %v316_v30 = vpop.permute.xlu1 %315 }
 0x2f1   : > { %1243 = vmatmul.mubr.msk.bf16.vlgmr.msra.gmra.mrb[0].mxu1 %vm229_vm4, %v316_v30 }
 0x2f2   : > { %1258 = vmatprep.mubr.msk.bf16.mxu1 %vm1483_vm0, %v1482_v0  ;;  %1255 = vmatpush3.bf16.msra.mxu1 %v1344_v9 }
 0x2f3   : > { %1256 = vmatprep.subr.bf16.mxu1 %v1482_v0 }
 0x2f6   : > { %1257 = vmatpush3.bf16.msra.mxu1 %v1345_v10 }
 0x2f7   : > { %1270 = vmatprep.subr.bf16.mxu1 %v1482_v0 }
 0x3c4   : > { %v366_v32 = vpop.f32.mrb[0].mxu1 }
 0x3c5   : > { %v372_v33 = vadd.f32 %v366_v32, %v308_v31  ;;  %v1244_v34 = vpop.f32.mrb[1].mxu1 }
 0x3c6   : > { %v369_v35 = vpop.f32.mrb[2].mxu1 }
 0x3c7   : > { %v1168_v36 = vmul.f32 -1.442695, %v372_v33  ;;  %v1245_v37 = vpop.f32.mrb[3].mxu1  ;;  %v1346_v35 = vld [vmem:[%s1570_s28] sm:$0xff]  }
 0x3c9   : > { %1362 = vpow2.f32 %v1168_v36  ;;  %v1347_v36 = vld [vmem:[%s1570_s28 + $0x8] sm:$0xff]  }
 0x3ca   : > { %1364 = vtanh.f32 %v372_v33 }
 0x3d3   : > { %v1363_v38 = vpop.eup %1362 }
 0x3d4   : > { %v377_v39 = vadd.f32 1.0, %v1363_v38  ;;  %v1365_v40 = vpop.eup %1364 }
 0x3d6   : > { %1366 = vrcp.f32 %v377_v39 }
 0x3e0   : > { %v1367_v41 = vpop.eup %1366 }
 0x3e1   : > { %v380_v42 = vsel %vm1595_vm3, %v1365_v40, %v1367_v41 }
 0x3e2   : > { %383 = vrot.lane.b32.xlu0 %v380_v42, %s1485_s9  ;;  %v381_v45 = vmul.f32 %v380_v42, %v292_v23 }
 0x454   : > { %v384_v43 = vpop.permute.xlu0 %383 }
 0x455   : > { %v386_v44 = vmul.f32 %v384_v43, %v380_v42 }
 0x457   : > { %388 = vrot.lane.b32.xlu1 %v386_v44, %s1486_s10 }
 0x4c9   : > { %v389_v46 = vpop.permute.xlu1 %388 }
 0x4ca   : > { %v391_v47 = vadd.f32 %v389_v46, %v381_v45 }
 0x4cc   : > { %1368 = vtanh.f32 %v391_v47 }
 0x4d6   : > { %v1369_v50 = vpop.eup %1368 }
 0x4d7   : > { %394 = vrot.lane.b32.xlu0 %v1369_v50, %s1485_s9 }
 0x549   : > { %v395_v51 = vpop.permute.xlu0 %394 }
 0x54a   : > { %v1633_v52 = vmul.f32 %v395_v51, %v380_v42  ;;  %v605_v42 = vld [vmem:[%s604_s26] sm:$0xff]  ;;  %s1875_s26 = sshll.u32 %s1718_s5, 3 }
 0x54b   : > { %s703_s19 = scalar_lea.vmem %s1589_s6, %s1875_s26 }
 0x54c   : > { %v408_v53 = vpack.c.bf16 %v1633_v52, %v1633_v52 }
 0x54e   : > { %414 = vrot.lane.b32.xlu1 %v408_v53, %s1486_s10 }
 0x5c0   : > { %v415_v54 = vpop.permute.xlu1 %414 }
 0x5c1   : > { %1251 = vmatmul.mubr.msk.bf16.vlgmr.msra.gmra.mrb[4].mxu0 %vm229_vm4, %v415_v54 }
 0x5c2   : > { %1266 = vmatprep.mubr.msk.bf16.mxu0 %vm1483_vm0, %v1482_v0  ;;  %1263 = vmatpush3.bf16.msra.mxu0 %v1346_v35 }
 0x5c3   : > { %1264 = vmatprep.subr.bf16.mxu0 %v1482_v0 }
 0x5c6   : > { %1265 = vmatpush3.bf16.msra.mxu0 %v1347_v36 }
 0x5c7   : > { %1278 = vmatprep.subr.bf16.mxu0 %v1482_v0 }
 0x694   : > { %v465_v56 = vpop.f32.mrb[4].mxu0 }
 0x695   : > { %v471_v57 = vadd.f32 %v465_v56, %v407_v55  ;;  %v1252_v58 = vpop.f32.mrb[5].mxu0 }
 0x696   : > { %v468_v59 = vpop.f32.mrb[6].mxu0 }
 0x697   : > { %v1173_v60 = vmul.f32 -1.442695, %v471_v57  ;;  %v1253_v61 = vpop.f32.mrb[7].mxu0 }
 0x698   : > { %v1349_v61 = vld [vmem:[%s1570_s28 + $0x8] sm:$0xff]  }
 0x699   : > { %1370 = vpow2.f32 %v1173_v60  ;;  %v1348_v60 = vld [vmem:[%s1570_s28] sm:$0xff]  }
 0x69a   : > { %1372 = vtanh.f32 %v471_v57 }
 0x6a3   : > { %v1371_v62 = vpop.eup %1370 }
 0x6a4   : > { %v476_v63 = vadd.f32 1.0, %v1371_v62  ;;  %v1373_v1 = vpop.eup %1372 }
 0x6a6   : > { %1374 = vrcp.f32 %v476_v63 }
 0x6b0   : > { %v1375_v2 = vpop.eup %1374 }
 0x6b1   : > { %v479_v3 = vsel %vm1595_vm3, %v1373_v1, %v1375_v2 }
 0x6b2   : > { %482 = vrot.lane.b32.xlu0 %v479_v3, %s1485_s9  ;;  %v480_v6 = vmul.f32 %v479_v3, %v391_v47 }
 0x724   : > { %v483_v4 = vpop.permute.xlu0 %482 }
 0x725   : > { %v485_v5 = vmul.f32 %v483_v4, %v479_v3  ;;  %v704_v4 = vld [vmem:[%s703_s19] sm:$0xff]  ;;  %s1740_s19 = scalar_select %p208_p11, 6, 1 }
 0x727   : > { %487 = vrot.lane.b32.xlu1 %v485_v5, %s1486_s10  ;;  %s1877_s26 = sshll.u32 %s1740_s19, 3 }
 0x728   : > { %s802_s4 = scalar_lea.vmem %s1589_s6, %s1877_s26 }
 0x799   : > { %v488_v7 = vpop.permute.xlu1 %487 }
 0x79a   : > { %v490_v8 = vadd.f32 %v488_v7, %v480_v6 }
 0x79c   : > { %1376 = vtanh.f32 %v490_v8 }
 0x7a6   : > { %v1377_v11 = vpop.eup %1376 }
 0x7a7   : > { %493 = vrot.lane.b32.xlu0 %v1377_v11, %s1485_s9 }
 0x819   : > { %v494_v12 = vpop.permute.xlu0 %493 }
 0x81a   : > { %v1658_v13 = vmul.f32 %v494_v12, %v479_v3 }
 0x81c   : > { %v507_v14 = vpack.c.bf16 %v1658_v13, %v1658_v13 }
 0x81e   : > { %513 = vrot.lane.b32.xlu1 %v507_v14, %s1486_s10 }
 0x890   : > { %v514_v16 = vpop.permute.xlu1 %513 }
 0x891   : > { %1259 = vmatmul.mubr.msk.bf16.vlgmr.msra.gmra.mrb[4].mxu1 %vm229_vm4, %v514_v16 }
 0x892   : > { %1274 = vmatprep.mubr.msk.bf16.mxu1 %vm1483_vm0, %v1482_v0  ;;  %1271 = vmatpush3.bf16.msra.mxu1 %v1348_v60 }
 0x893   : > { %1272 = vmatprep.subr.bf16.mxu1 %v1482_v0 }
 0x896   : > { %1273 = vmatpush3.bf16.msra.mxu1 %v1349_v61 }
 0x897   : > { %1286 = vmatprep.subr.bf16.mxu1 %v1482_v0 }
 0x964   : > { %v564_v18 = vpop.f32.mrb[4].mxu1 }
 0x965   : > { %v570_v19 = vadd.f32 %v564_v18, %v506_v17  ;;  %v1260_v20 = vpop.f32.mrb[5].mxu1 }
 0x966   : > { %v567_v21 = vpop.f32.mrb[6].mxu1 }
 0x967   : > { %v1178_v22 = vmul.f32 -1.442695, %v570_v19  ;;  %v1261_v23 = vpop.f32.mrb[7].mxu1 }
 0x968   : > { %v1350_v23 = vld [vmem:[%s1570_s28] sm:$0xff]  }
 0x969   : > { %1378 = vpow2.f32 %v1178_v22 }
 0x96a   : > { %1380 = vtanh.f32 %v570_v19 }
 0x973   : > { %v1379_v24 = vpop.eup %1378 }
 0x974   : > { %v575_v25 = vadd.f32 1.0, %v1379_v24  ;;  %v1381_v26 = vpop.eup %1380  ;;  %v1351_v24 = vld [vmem:[%s1570_s28 + $0x8] sm:$0xff]  }
 0x976   : > { %1382 = vrcp.f32 %v575_v25 }
 0x980   : > { %v1383_v27 = vpop.eup %1382 }
 0x981   : > { %v578_v29 = vsel %vm1595_vm3, %v1381_v26, %v1383_v27 }
 0x982   : > { %581 = vrot.lane.b32.xlu0 %v578_v29, %s1485_s9  ;;  %v579_v32 = vmul.f32 %v578_v29, %v490_v8 }
 0x9f4   : > { %v582_v30 = vpop.permute.xlu0 %581 }
 0x9f5   : > { %v584_v31 = vmul.f32 %v582_v30, %v578_v29 }
 0x9f7   : > { %586 = vrot.lane.b32.xlu1 %v584_v31, %s1486_s10  ;;  %v803_v31 = vld [vmem:[%s802_s4] sm:$0xff]  ;;  %s1758_s4 = scalar_select %p208_p11, 7, 0 }
 0xa69   : > { %v587_v33 = vpop.permute.xlu1 %586 }
 0xa6a   : > { %v589_v34 = vadd.f32 %v587_v33, %v579_v32 }
 0xa6c   : > { %1384 = vtanh.f32 %v589_v34 }
 0xa76   : > { %v1385_v37 = vpop.eup %1384 }
 0xa77   : > { %592 = vrot.lane.b32.xlu0 %v1385_v37, %s1485_s9 }
 0xae9   : > { %v593_v38 = vpop.permute.xlu0 %592 }
 0xaea   : > { %v1683_v39 = vmul.f32 %v593_v38, %v578_v29 }
 0xaec   : > { %v606_v40 = vpack.c.bf16 %v1683_v39, %v1683_v39 }
 0xaee   : > { %612 = vrot.lane.b32.xlu1 %v606_v40, %s1486_s10 }
 0xb60   : > { %v613_v41 = vpop.permute.xlu1 %612 }
 0xb61   : > { %1267 = vmatmul.mubr.msk.bf16.vlgmr.msra.gmra.mrb[8].mxu0 %vm229_vm4, %v613_v41 }
 0xb62   : > { %1282 = vmatprep.mubr.msk.bf16.mxu0 %vm1483_vm0, %v1482_v0  ;;  %1279 = vmatpush3.bf16.msra.mxu0 %v1350_v23 }
 0xb63   : > { %1280 = vmatprep.subr.bf16.mxu0 %v1482_v0 }
 0xb66   : > { %1281 = vmatpush3.bf16.msra.mxu0 %v1351_v24 }
 0xc34   : > { %v663_v43 = vpop.f32.mrb[8].mxu0 }
 0xc35   : > { %v669_v44 = vadd.f32 %v663_v43, %v605_v42  ;;  %v1268_v45 = vpop.f32.mrb[9].mxu0 }
 0xc36   : > { %v666_v46 = vpop.f32.mrb[10].mxu0 }
 0xc37   : > { %v1183_v47 = vmul.f32 -1.442695, %v669_v44  ;;  %v1269_v48 = vpop.f32.mrb[11].mxu0 }
 0xc39   : > { %1386 = vpow2.f32 %v1183_v47 }
 0xc3a   : > { %1388 = vtanh.f32 %v669_v44 }
 0xc43   : > { %v1387_v49 = vpop.eup %1386 }
 0xc44   : > { %v674_v50 = vadd.f32 1.0, %v1387_v49  ;;  %v1389_v51 = vpop.eup %1388  ;;  %v1352_v49 = vld [vmem:[%s1570_s28] sm:$0xff]  }
 0xc46   : > { %1390 = vrcp.f32 %v674_v50  ;;  %v1353_v50 = vld [vmem:[%s1570_s28 + $0x8] sm:$0xff]   ;;  %s1878_s28 = sshll.u32 %s1758_s4, 3 }
 0xc47   : > { %s901_s26 = scalar_lea.vmem %s1589_s6, %s1878_s28  ;;  %s1780_s28 = scalar_lea.vmem %s1872_s2, %s1203_s30 }
 0xc48   : > { %s303_s25 = scalar_lea.vmem %s1780_s28, %s1160_s7  ;;  %s402_s24 = scalar_lea.vmem %s1780_s28, %s1164_s17 }
 0xc49   : > { %s501_s30 = scalar_lea.vmem %s1780_s28, %s1884_s29  ;;  %s1885_s7 = sshll.u32 %s1668_s27, 3 }
 0xc4a   : > { %s798_s17 = scalar_lea.vmem %s1780_s28, %s1887_s11  ;;  %s184_s27 = sand.u32 1, %s1472_s13  }
 0xc50   : > { %v1391_v53 = vpop.eup %1390 }
 0xc51   : > { %v677_v54 = vsel %vm1595_vm3, %v1389_v51, %v1391_v53 }
 0xc52   : > { %680 = vrot.lane.b32.xlu0 %v677_v54, %s1485_s9  ;;  %v678_v57 = vmul.f32 %v677_v54, %v589_v34 }
 0xcc4   : > { %v681_v55 = vpop.permute.xlu0 %680 }
 0xcc5   : > { %v683_v56 = vmul.f32 %v681_v55, %v677_v54 }
 0xcc7   : > { %685 = vrot.lane.b32.xlu1 %v683_v56, %s1486_s10 }
 0xd39   : > { %v686_v58 = vpop.permute.xlu1 %685 }
 0xd3a   : > { %v688_v59 = vadd.f32 %v686_v58, %v678_v57 }
 0xd3c   : > { %1392 = vtanh.f32 %v688_v59 }
 0xd46   : > { %v1393_v62 = vpop.eup %1392 }
 0xd47   : > { %691 = vrot.lane.b32.xlu0 %v1393_v62, %s1485_s9 }
 0xdb9   : > { %v692_v63 = vpop.permute.xlu0 %691 }
 0xdba   : > { %v1708_v1 = vmul.f32 %v692_v63, %v677_v54 }
 0xdbc   : > { %v705_v2 = vpack.c.bf16 %v1708_v1, %v1708_v1 }
 0xdbe   : > { %711 = vrot.lane.b32.xlu1 %v705_v2, %s1486_s10 }
 0xe30   : > { %v712_v3 = vpop.permute.xlu1 %711 }
 0xe31   : > { %1275 = vmatmul.mubr.msk.bf16.vlgmr.msra.gmra.mrb[8].mxu1 %vm229_vm4, %v712_v3 }
 0xe32   : > { %1290 = vmatprep.mubr.msk.bf16.mxu1 %vm1483_vm0, %v1482_v0  ;;  %1287 = vmatpush3.bf16.msra.mxu1 %v1352_v49 }
 0xe33   : > { %1288 = vmatprep.subr.bf16.mxu1 %v1482_v0  ;;  %v902_v0 = vld [vmem:[%s901_s26] sm:$0xff]  ;;  %s1200_s26 = sshll.u32 %s1529_s16, 7  ;;  %s1005_s16 = scalar_lea.sflag [#allocation3], %s184_s27 }
 0xe36   : > { %1289 = vmatpush3.bf16.msra.mxu1 %v1353_v50 }
 0xf04   : > { %v762_v5 = vpop.f32.mrb[8].mxu1 }
 0xf05   : > { %v768_v6 = vadd.f32 %v762_v5, %v704_v4  ;;  %v1276_v7 = vpop.f32.mrb[9].mxu1 }
 0xf06   : > { %v765_v8 = vpop.f32.mrb[10].mxu1 }
 0xf07   : > { %v1188_v9 = vmul.f32 -1.442695, %v768_v6  ;;  %v1277_v10 = vpop.f32.mrb[11].mxu1 }
 0xf09   : > { %1394 = vpow2.f32 %v1188_v9 }
 0xf0a   : > { %1396 = vtanh.f32 %v768_v6 }
 0xf13   : > { %v1395_v11 = vpop.eup %1394 }
 0xf14   : > { %v773_v12 = vadd.f32 1.0, %v1395_v11  ;;  %v1397_v14 = vpop.eup %1396 }
 0xf16   : > { %1398 = vrcp.f32 %v773_v12 }
 0xf20   : > { %v1399_v16 = vpop.eup %1398 }
 0xf21   : > { %v776_v17 = vsel %vm1595_vm3, %v1397_v14, %v1399_v16 }
 0xf22   : > { %779 = vrot.lane.b32.xlu0 %v776_v17, %s1485_s9  ;;  %v777_v20 = vmul.f32 %v776_v17, %v688_v59 }
 0xf94   : > { %v780_v18 = vpop.permute.xlu0 %779 }
 0xf95   : > { %v782_v19 = vmul.f32 %v780_v18, %v776_v17 }
 0xf97   : > { %784 = vrot.lane.b32.xlu1 %v782_v19, %s1486_s10 }
0x1009   : > { %v785_v21 = vpop.permute.xlu1 %784 }
0x100a   : > { %v787_v22 = vadd.f32 %v785_v21, %v777_v20 }
0x100c   : > { %1400 = vtanh.f32 %v787_v22 }
0x1016   : > { %v1401_v25 = vpop.eup %1400 }
0x1017   : > { %790 = vrot.lane.b32.xlu0 %v1401_v25, %s1485_s9 }
0x1089   : > { %v791_v26 = vpop.permute.xlu0 %790 }
0x108a   : > { %v1732_v27 = vmul.f32 %v791_v26, %v776_v17 }
0x108c   : > { %v804_v29 = vpack.c.bf16 %v1732_v27, %v1732_v27 }
0x108e   : > { %810 = vrot.lane.b32.xlu1 %v804_v29, %s1486_s10 }
0x1100   : > { %v811_v30 = vpop.permute.xlu1 %810 }
0x1101   : > { %1283 = vmatmul.mubr.msk.bf16.vlgmr.msra.gmra.mrb[12].mxu0 %vm229_vm4, %v811_v30 }
0x11d4   : > { %v861_v32 = vpop.f32.mrb[12].mxu0 }
0x11d5   : > { %v867_v33 = vadd.f32 %v861_v32, %v803_v31  ;;  %v1284_v34 = vpop.f32.mrb[13].mxu0 }
0x11d6   : > { %v864_v35 = vpop.f32.mrb[14].mxu0 }
0x11d7   : > { %v1193_v36 = vmul.f32 -1.442695, %v867_v33  ;;  %v1285_v37 = vpop.f32.mrb[15].mxu0 }
0x11d9   : > { %1402 = vpow2.f32 %v1193_v36 }
0x11da   : > { %1404 = vtanh.f32 %v867_v33 }
0x11e3   : > { %v1403_v38 = vpop.eup %1402 }
0x11e4   : > { %v872_v40 = vadd.f32 1.0, %v1403_v38  ;;  %v1405_v41 = vpop.eup %1404 }
0x11e6   : > { %1406 = vrcp.f32 %v872_v40 }
0x11f0   : > { %v1407_v42 = vpop.eup %1406 }
0x11f1   : > { %v875_v43 = vsel %vm1595_vm3, %v1405_v41, %v1407_v42 }
0x11f2   : > { %878 = vrot.lane.b32.xlu0 %v875_v43, %s1485_s9  ;;  %v876_v46 = vmul.f32 %v875_v43, %v787_v22 }
0x1264   : > { %v879_v44 = vpop.permute.xlu0 %878 }
0x1265   : > { %v881_v45 = vmul.f32 %v879_v44, %v875_v43 }
0x1267   : > { %883 = vrot.lane.b32.xlu1 %v881_v45, %s1486_s10 }
0x12d9   : > { %v884_v47 = vpop.permute.xlu1 %883 }
0x12da   : > { %v886_v48 = vadd.f32 %v884_v47, %v876_v46 }
0x12dc   : > { %1408 = vtanh.f32 %v886_v48 }
0x12e6   : > { %v1409_v51 = vpop.eup %1408 }
0x12e7   : > { %889 = vrot.lane.b32.xlu0 %v1409_v51, %s1485_s9 }
0x1359   : > { %v890_v53 = vpop.permute.xlu0 %889 }
0x135a   : > { %v892_v54 = vmul.f32 %v890_v53, %v875_v43 }
0x135c   : > { %v903_v55 = vpack.c.bf16 %v892_v54, %v892_v54 }
0x135e   : > { %909 = vrot.lane.b32.xlu1 %v903_v55, %s1486_s10 }
0x13d0   : > { %v910_v56 = vpop.permute.xlu1 %909 }
0x13d1   : > { %1291 = vmatmul.mubr.msk.bf16.vlgmr.msra.gmra.mrb[12].mxu1 %vm229_vm4, %v910_v56 }
0x14a4   : > { %v960_v57 = vpop.f32.mrb[12].mxu1 }
0x14a5   : > { %v966_v58 = vadd.f32 %v960_v57, %v902_v0  ;;  %v1292_v59 = vpop.f32.mrb[13].mxu1 }
0x14a6   : > { %v963_v60 = vpop.f32.mrb[14].mxu1 }
0x14a7   : > { %v1198_v61 = vmul.f32 -1.442695, %v966_v58  ;;  %v1293_v62 = vpop.f32.mrb[15].mxu1 }
0x14a9   : > { %1410 = vpow2.f32 %v1198_v61 }
0x14aa   : > { %1412 = vtanh.f32 %v966_v58 }
0x14b3   : > { %v1411_v63 = vpop.eup %1410 }
0x14b4   : > { %v971_v2 = vadd.f32 1.0, %v1411_v63  ;;  %v1413_v3 = vpop.eup %1412 }
0x14b6   : > { %1414 = vrcp.f32 %v971_v2 }
0x14c0   : > { %v1415_v4 = vpop.eup %1414 }
0x14c1   : > { %v974_v5 = vsel %vm1595_vm3, %v1413_v3, %v1415_v4 }
0x14c2   : > { %977 = vrot.lane.b32.xlu0 %v974_v5, %s1485_s9  ;;  %v975_v15 = vmul.f32 %v974_v5, %v886_v48 }
0x1534   : > { %v978_v6 = vpop.permute.xlu0 %977 }
0x1535   : > { %v980_v7 = vmul.f32 %v978_v6, %v974_v5 }
0x1537   : > { %982 = vrot.lane.b32.xlu1 %v980_v7, %s1486_s10 }
0x153b   : > { %300 = vrot.lane.b32.xlu1 %v1608_v28, %s1486_s10 }
0x153f   : > { %498 = vrot.lane.b32.xlu1 %v1658_v13, %s1486_s10 }
0x1543   : > { %696 = vrot.lane.b32.xlu1 %v1708_v1, %s1486_s10 }
0x1547   : > { %894 = vrot.lane.b32.xlu1 %v892_v54, %s1486_s10 }
0x15a9   : > { %v983_v28 = vpop.permute.xlu1 %982 }
0x15aa   : > { %v985_v8 = vadd.f32 %v983_v28, %v975_v15 }
0x15ac   : > { %1416 = vtanh.f32 %v985_v8 }
0x15ad   : > { %v301_v13 = vpop.permute.xlu1 %300 }
0x15ae   : > { %304 = vst.msk [vmem:[%s303_s25] sm:$0xff] %vm229_vm4, %v301_v13  ;;  %s1886_s25 = sshll.u32 %s1693_s8, 3  ;;  %s1153_s8 = sshll.u32 %s184_s27, 3 }
0x15af   : > { %s699_s6 = scalar_lea.vmem %s1780_s28, %s1886_s25  ;;  %s1826_s25 = scalar_lea.hbm %s1873_s3, %s1200_s26 }
0x15b1   : > { %v499_v10 = vpop.permute.xlu1 %498 }
0x15b6   : > { %v1417_v1 = vpop.eup %1416 }
0x15b7   : > { %988 = vrot.lane.b32.xlu0 %v1417_v1, %s1485_s9  ;;  %s600_s9 = scalar_lea.vmem %s1780_s28, %s1885_s7 }
0x15bb   : > { %399 = vrot.lane.b32.xlu0 %v1633_v52, %s1486_s10 }
0x15bf   : > { %597 = vrot.lane.b32.xlu0 %v1683_v39, %s1486_s10  ;;  %v697_v39 = vpop.permute.xlu1 %696 }
0x15c3   : > { %795 = vrot.lane.b32.xlu0 %v1732_v27, %s1486_s10  ;;  %v895_v16 = vpop.permute.xlu1 %894 }
0x1629   : > { %v989_v9 = vpop.permute.xlu0 %988 }
0x162a   : > { %v991_v11 = vmul.f32 %v989_v9, %v974_v5 }
0x162c   : > { %993 = vrot.lane.b32.xlu0 %v991_v11, %s1486_s10  ;;  %s1888_s10 = sshll.u32 %s1740_s19, 3 }
0x162d   : > { %v400_v52 = vpop.permute.xlu0 %399  ;;  %s897_s20 = scalar_lea.vmem %s1780_s28, %s1888_s10 }
0x162e   : > { %403 = vst.msk [vmem:[%s402_s24] sm:$0xff] %vm229_vm4, %v400_v52  ;;  %s186_s24 = scalar_lea.vmem [#allocation2], %s1153_s8 }
0x162f   : > { %502 = vst.msk [vmem:[%s501_s30] sm:$0xff] %vm229_vm4, %v499_v10  ;;  %s1021_s29 = sshll.u32 %s186_s24, 4  ;;  %s1889_s30 = sshll.u32 %s1758_s4, 3  ;;  %s1828_s29 = int_to_ptr.vmem [resolvable:$true] %s1021_s29 }
0x1630   : > { %s996_s7 = scalar_lea.vmem %s1780_s28, %s1889_s30  ;;  %s1418_s19 = scalar_lea.vmem %s1828_s29, 128 }
0x1631   : > { %v598_v12 = vpop.permute.xlu0 %597  ;;  %p1419_p12 = scmp.ne.s32.totalorder %s1828_s29, %s1418_s19  ;;  %s1487_s4 = smov [#allocation2]  }
0x1632   : > { %601 = vst.msk [vmem:[%s600_s9] sm:$0xff] %vm229_vm4, %v598_v12  ;;  %s1422_s28 = sshll.u32 %s1487_s4, 4  ;;  %s1423_s28 = int_to_ptr.vmem [resolvable:$false] %s1422_s28 }
0x1633   : > { %700 = vst.msk [vmem:[%s699_s6] sm:$0xff] %vm229_vm4, %v697_v39  ;;  %p1420_p13 = pnand %p1419_p12, %p1546_p5  ;;  %s1424_s6 = scalar_lea.vmem %s1423_s28, 256 }
0x1634   : > { %p1425_p1 = scmp.lt.s32.totalorder %s1828_s29, %s1423_s28  ;;  %p1426_p2 = scmp.lt.s32.totalorder %s1424_s6, %s1418_s19 }
0x1635   : > { %v796_v14 = vpop.permute.xlu0 %795  ;;  %p1421_p0 = pneg %p1420_p13 }
0x1636   : > { %799 = vst.msk [vmem:[%s798_s17] sm:$0xff] %vm229_vm4, %v796_v14  ;;  %p1427_p3 = por %p1426_p2, %p1425_p1 }
0x1637   : > { %898 = vst.msk [vmem:[%s897_s20] sm:$0xff] %vm229_vm4, %v895_v16 }
0x1638   : > { %p1428_p4 = pnand %p1427_p3, %p1421_p0 }
0x169e   : > { %v994_v17 = vpop.permute.xlu0 %993 }
0x169f   : > { %997 = vst.msk [vmem:[%s996_s7] sm:$0xff] %vm229_vm4, %v994_v17  ;;  %998 = vst.msk [vmem:[%s186_s24] sm:$0xff] %vm229_vm4, %v994_v17 }
0x16a0   : > { %1431 = shalt.err (!%p1428_p4)
}
0x16a1   : > { %s1432_s11 = scalar_lea.hbm %s1826_s25, 128  ;;  %s1436_s20 = scalar_lea.hbm %s1873_s3, 256 }
0x16a2   : > { %p1433_p7 = scmp.ne.s32.totalorder %s1826_s25, %s1432_s11  ;;  %p1437_p10 = scmp.lt.u32.totalorder %s1826_s25, %s1873_s3 }
0x16a3   : > { %p1438_p11 = scmp.lt.u32.totalorder %s1436_s20, %s1432_s11  ;;  %p1440_p13 = scmp.lt.u32.totalorder %s1432_s11, %s1826_s25 }
0x16a4   : > { %p1434_p8 = pnand %p1433_p7, %p1546_p5 }
0x16a5   : > { %p1439_p12 = por %p1438_p11, %p1437_p10 }
0x16a6   : > { %p1435_p9 = pneg %p1434_p8 }
0x16a7   : > { %p1441_p0 = por %p1440_p13, %p1439_p12 }
0x16a9   : > { %p1442_p1 = pnand %p1441_p0, %p1435_p9 }
0x16ab   : > { %1445 = shalt.err (!%p1442_p1)
}
0x16ac   : > { %1294 = dma.vmem_to_hbm [thread:$0]  (%p1546_p5), %s1828_s29, 128, %s1826_s25, %s1005_s16  }
0x16ad PF: > { %p1300_p2 = scmp.ge.s32.totalorder %s1480_s15, 2  ;;  %s1041_s26 = sand.u32 1, %s1468_s12  }
0x16ae   : > { %s1042_s24 = scalar_lea.sflag [#allocation3], %s1041_s26 }
0x16af   : > { %p1297_p3 = pnand %p1300_p2, %p1550_p6 }
0x16b1   : > { %1463 = dma.done.wait (!%p1297_p3), %s1042_s24, 128  }
0x16b2   : > { %1465 = vsyncadd (!%p1297_p3), %s1042_s24, 4294967168  ;;  %p14_p4 = scmp.ge.s32.totalorder %s1533_s18, 4   ;;  %s1890_s12 = smov %s1472_s13 }
0x16b3   : > { %s1891_s13 = smov %s1476_s14  ;;  %s1892_s14 = smov %s1544_s21 }
0x16b4   : > { %s1893_s15 = smov %s1533_s18  ;;  %16 = sbr.rel (!%p14_p4) target bundleno = 3 (0x3), region = 94 }
0x16bb   :  { %1047 = vsyncpa [#allocation3], 1 }
0x16bc   :  { %1049 = vsyncpa [#allocation3 + $0x1], 1 }

</bundles_post_ra>
